<compile_context>
chip_gen: v5e
topology: v5e:2x2
jax: 0.10.0
libtpu: 0.0.40
codegen_flags: <defaults>
</compile_context>

<pallas_src>
import jax
import jax.numpy as jnp
from jax import lax
from jax.experimental import pallas as pl
from jax.experimental.pallas import tpu as pltpu

NUM_BRANCHES = 5      # center, top-left, top-right, bottom-left, bottom-right
HEAD_LANES = 128      # fused-head lane padding -> lane-dense output stores


def _corner_rpn_kernel(x_ref, wconv_ref, bconv_ref, whead_ref, bhead_ref,
                       out_ref, xpad_ref):
    """One (image n, branch b) grid step.

    x_ref    : (1, H, W, C)   f32   input feature map (shared across branches)
    wconv_ref: (1, 9, C, C)   bf16  3x3 conv taps, tap index = ky*3 + kx
    bconv_ref: (1, 1, C)      f32
    whead_ref: (1, C, P)      bf16  [wobj | wdel | zero pad], P = 128
    bhead_ref: (1, 1, P)      f32
    out_ref  : (1, 1, H*W, P) f32   fused head output (lane-dense)
    xpad_ref : (H+2, W+2, C)  f32   VMEM scratch: zero-padded image halo
    """
    H, W, C = x_ref.shape[1], x_ref.shape[2], x_ref.shape[3]
    HW = H * W

    # Build the zero-padded halo in VMEM (avoids a jnp.pad HBM round trip).
    xpad_ref[...] = jnp.zeros_like(xpad_ref)
    xpad_ref[pl.ds(1, H), pl.ds(1, W), :] = x_ref[0]

    # 3x3 conv == 9 shifted (H*W, C) x (C, C) matmuls, f32 accumulation.
    # Static Python loop -> fully unrolled, visible to the scheduler.
    acc = jnp.zeros((HW, C), jnp.float32)
    for dy in range(3):
        for dx in range(3):
            patch = xpad_ref[pl.ds(dy, H), pl.ds(dx, W), :]          # (H, W, C)
            patch = patch.reshape(HW, C).astype(jnp.bfloat16)
            acc = acc + jnp.dot(patch, wconv_ref[0, dy * 3 + dx],
                                preferred_element_type=jnp.float32)

    # Bias + ReLU in f32 (v5e VPU/EUP have no bf16), then fused 1x1 heads.
    t = jnp.maximum(acc + bconv_ref[0], 0.0).astype(jnp.bfloat16)    # (HW, C)
    out = jnp.dot(t, whead_ref[0], preferred_element_type=jnp.float32)
    out_ref[0, 0] = (out + bhead_ref[0]).astype(out_ref.dtype)       # (HW, P)


def pack_corner_rpn_params(params, lane_pad=HEAD_LANES):
    """Stack the 5 per-branch parameter sets into kernel-friendly arrays."""
    C = params[0]["wconv"].shape[2]
    A = params[0]["wobj"].shape[1]
    D = params[0]["wdel"].shape[1]
    P = lane_pad * pl.cdiv(A + D, lane_pad)

    wconv = jnp.stack([p["wconv"].reshape(9, C, C) for p in params])
    bconv = jnp.stack([p["bconv"].reshape(1, C) for p in params])
    whead = jnp.stack([
        jnp.pad(jnp.concatenate([p["wobj"], p["wdel"]], axis=1),
                ((0, 0), (0, P - (A + D)))) for p in params])
    bhead = jnp.stack([
        jnp.pad(jnp.concatenate([p["bobj"], p["bdel"]]),
                (0, P - (A + D))).reshape(1, P) for p in params])

    return dict(
        wconv=wconv.astype(jnp.bfloat16),
        bconv=bconv.astype(jnp.float32),
        whead=whead.astype(jnp.bfloat16),
        bhead=bhead.astype(jnp.float32),
        num_anchors=A, deltas_dim=D, head_lanes=P)


def corner_rpn_level_forward(packed, x_nchw):
    """All 5 branches on one feature level in a single pallas_call."""
    N, C, H, W = x_nchw.shape
    A, D, P = packed["num_anchors"], packed["deltas_dim"], packed["head_lanes"]
    HW = H * W
    x_nhwc = jnp.transpose(x_nchw, (0, 2, 3, 1))

    # TODO(synk): for large FPN levels, tile H with a +2-row halo index_map
    # (and row-tiled out_spec) so the whole-image block + scratch stays within
    # v7x's 64 MiB physical VMEM; whole-image blocks are fine at these sizes.
    out = pl.pallas_call(
        _corner_rpn_kernel,
        out_shape=jax.ShapeDtypeStruct((NUM_BRANCHES, N, HW, P), jnp.float32),
        grid=(N, NUM_BRANCHES),
        in_specs=[
            # Image block index ignores the (fastest-varying) branch axis, so
            # the same VMEM tile is reused for all 5 branches of an image.
            pl.BlockSpec((1, H, W, C), lambda n, b: (n, 0, 0, 0)),
            pl.BlockSpec((1, 9, C, C), lambda n, b: (b, 0, 0, 0)),
            pl.BlockSpec((1, 1, C), lambda n, b: (b, 0, 0)),
            pl.BlockSpec((1, C, P), lambda n, b: (b, 0, 0)),
            pl.BlockSpec((1, 1, P), lambda n, b: (b, 0, 0)),
        ],
        out_specs=pl.BlockSpec((1, 1, HW, P), lambda n, b: (b, n, 0, 0)),
        scratch_shapes=[pltpu.VMEM((H + 2, W + 2, C), jnp.float32)],
        compiler_params=pltpu.CompilerParams(
            dimension_semantics=("parallel", "parallel")),
    )(x_nhwc, packed["wconv"], packed["bconv"],
      packed["whead"], packed["bhead"])

    out = out.reshape(NUM_BRANCHES, N, H, W, P)
    obj = jnp.transpose(out[..., :A], (0, 1, 4, 2, 3))       # (5, N, A, H, W)
    dl = jnp.transpose(out[..., A:A + D], (0, 1, 4, 2, 3))   # (5, N, 4A, H, W)
    return obj, dl


def corner_rpn_head_forward(params, features_nchw):
    """Equivalent of CornerRPNHead.forward.

    Returns (pred_objectness_logits, pred_anchor_deltas): each is a list over
    the 5 corner branches of lists over feature levels, NCHW like PyTorch.
    """
    packed = pack_corner_rpn_params(params)
    per_level = [corner_rpn_level_forward(packed, x) for x in features_nchw]
    pred_objectness_logits = []
    pred_anchor_deltas = []
    for b in range(NUM_BRANCHES):
        pred_objectness_logits.append([obj[b] for obj, _ in per_level])
        pred_anchor_deltas.append([dl[b] for _, dl in per_level])
    return pred_objectness_logits, pred_anchor_deltas


def init_corner_rpn_params(key, in_channels, num_anchors, box_dim=4):
    """Deterministic init matching nn.init.normal_(std=0.01) / zero bias."""
    C, A = in_channels, num_anchors
    D = A * box_dim
    params = []
    for _ in range(NUM_BRANCHES):
        key, k1, k2, k3 = jax.random.split(key, 4)
        params.append(dict(
            wconv=0.01 * jax.random.normal(k1, (3, 3, C, C), jnp.float32),
            bconv=jnp.zeros((C,), jnp.float32),
            wobj=0.01 * jax.random.normal(k2, (C, A), jnp.float32),
            bobj=jnp.zeros((A,), jnp.float32),
            wdel=0.01 * jax.random.normal(k3, (C, D), jnp.float32),
            bdel=jnp.zeros((D,), jnp.float32),
        ))
    return params


# ------------------------- pure-JAX f32 reference ------------------------- #
def _ref_branch(x_nhwc, p):
    t = lax.conv_general_dilated(
        x_nhwc, p["wconv"], (1, 1), "SAME",
        dimension_numbers=("NHWC", "HWIO", "NHWC"))
    t = jax.nn.relu(t + p["bconv"])
    obj = jnp.einsum("nhwc,ca->nhwa", t, p["wobj"]) + p["bobj"]
    dl = jnp.einsum("nhwc,cd->nhwd", t, p["wdel"]) + p["bdel"]
    return obj, dl


if __name__ == "__main__":
    key = jax.random.PRNGKey(0)
    in_channels, num_anchors, box_dim = 32, 3, 4
    batch = 2

    pkey, f0key, f1key = jax.random.split(key, 3)
    params = init_corner_rpn_params(pkey, in_channels, num_anchors, box_dim)

    # Two FPN-like feature levels, NCHW like the PyTorch module expects.
    features = [
        jax.random.normal(f0key, (batch, in_channels, 16, 16), jnp.float32),
        jax.random.normal(f1key, (batch, in_channels, 8, 8), jnp.float32),
    ]

    logits, deltas = corner_rpn_head_forward(params, features)
    jax.block_until_ready((logits, deltas))

    # Verify against a plain-JAX f32 reference. The kernel runs its matmuls in
    # bf16 (f32 accumulation), so tolerances are loosened accordingly.
    for b, p in enumerate(params):
        for l, x in enumerate(features):
            x_nhwc = jnp.transpose(x, (0, 2, 3, 1))
            ref_obj, ref_dl = _ref_branch(x_nhwc, p)
            got_obj = jnp.transpose(logits[b][l], (0, 2, 3, 1))
            got_dl = jnp.transpose(deltas[b][l], (0, 2, 3, 1))
            assert jnp.allclose(got_obj, ref_obj, rtol=2e-2, atol=2e-3), (b, l)
            assert jnp.allclose(got_dl, ref_dl, rtol=2e-2, atol=2e-3), (b, l)

    # Sanity-check output shapes against PyTorch conventions.
    assert len(logits) == NUM_BRANCHES and len(deltas) == NUM_BRANCHES
    assert logits[0][0].shape == (batch, num_anchors, 16, 16)
    assert deltas[0][0].shape == (batch, num_anchors * box_dim, 16, 16)
    assert logits[0][1].shape == (batch, num_anchors, 8, 8)
    assert deltas[0][1].shape == (batch, num_anchors * box_dim, 8, 8)

    print("KERNEL_OK")
</pallas_src>

<mosaic_0001>
module attributes {stable_mosaic.version = 11 : i64} {
  func.func @_corner_rpn_kernel(%arg0: i32, %arg1: i32, %arg2: memref<1x16x16x32xf32, #tpu.memory_space<vmem>>, %arg3: memref<1x9x32x32xbf16, #tpu.memory_space<vmem>>, %arg4: memref<1x1x32xf32, #tpu.memory_space<vmem>>, %arg5: memref<1x32x128xbf16, #tpu.memory_space<vmem>>, %arg6: memref<1x1x128xf32, #tpu.memory_space<vmem>>, %arg7: memref<1x1x256x128xf32, #tpu.memory_space<vmem>>, %arg8: memref<18x18x32xf32, #tpu.memory_space<vmem>>) attributes {dimension_semantics = [#tpu.dimension_semantics<parallel>, #tpu.dimension_semantics<parallel>], iteration_bounds = array<i64: 2, 5>, scalar_prefetch = 0 : i64, scratch_operands = 1 : i64, tpu.core_type = #tpu.core_type<tc>, window_params = [{transform_indices = @transform_0, window_bounds = array<i64: 1, 16, 16, 32>}, {transform_indices = @transform_1, window_bounds = array<i64: 1, 9, 32, 32>}, {transform_indices = @transform_2, window_bounds = array<i64: 1, 1, 32>}, {transform_indices = @transform_3, window_bounds = array<i64: 1, 32, 128>}, {transform_indices = @transform_4, window_bounds = array<i64: 1, 1, 128>}, {transform_indices = @transform_5, window_bounds = array<i64: 1, 1, 256, 128>}]} {
    %cst = arith.constant 0.000000e+00 : f32
    %0 = vector.broadcast %cst : f32 to vector<18x18x32xf32>
    %c0 = arith.constant 0 : index
    %c0_0 = arith.constant 0 : index
    %c0_1 = arith.constant 0 : index
    %1 = vector.load %arg8[%c0, %c0_0, %c0_1] : memref<18x18x32xf32, #tpu.memory_space<vmem>>, vector<18x18x32xf32>
    tpu.vector_store %arg8[%c0, %c0_0, %c0_1], %0 {strides = array<i32>} : memref<18x18x32xf32, #tpu.memory_space<vmem>>, vector<18x18x32xf32>,
    %c0_2 = arith.constant 0 : index
    %c0_3 = arith.constant 0 : index
    %c0_4 = arith.constant 0 : index
    %c0_5 = arith.constant 0 : index
    %2 = vector.load %arg2[%c0_2, %c0_3, %c0_4, %c0_5] : memref<1x16x16x32xf32, #tpu.memory_space<vmem>>, vector<1x16x16x32xf32>
    %3 = vector.shape_cast %2 : vector<1x16x16x32xf32> to vector<16x16x32xf32>
    %c1 = arith.constant 1 : index
    %c1_6 = arith.constant 1 : index
    %c0_7 = arith.constant 0 : index
    %4 = vector.load %arg8[%c1, %c1_6, %c0_7] : memref<18x18x32xf32, #tpu.memory_space<vmem>>, vector<16x16x32xf32>
    tpu.vector_store %arg8[%c1, %c1_6, %c0_7], %3 {strides = array<i32>} : memref<18x18x32xf32, #tpu.memory_space<vmem>>, vector<16x16x32xf32>,
    %cst_8 = arith.constant 0.000000e+00 : f32
    %5 = vector.broadcast %cst_8 : f32 to vector<256x32xf32>
    %c0_9 = arith.constant 0 : index
    %c0_10 = arith.constant 0 : index
    %c0_11 = arith.constant 0 : index
    %6 = vector.load %arg8[%c0_9, %c0_10, %c0_11] : memref<18x18x32xf32, #tpu.memory_space<vmem>>, vector<16x16x32xf32>
    %7 = vector.shape_cast %6 : vector<16x16x32xf32> to vector<256x32xf32>
    %8 = arith.truncf %7 : vector<256x32xf32> to vector<256x32xbf16>
    %c0_12 = arith.constant 0 : index
    %c0_13 = arith.constant 0 : index
    %c0_14 = arith.constant 0 : index
    %c0_15 = arith.constant 0 : index
    %9 = vector.load %arg3[%c0_12, %c0_13, %c0_14, %c0_15] : memref<1x9x32x32xbf16, #tpu.memory_space<vmem>>, vector<1x1x32x32xbf16>
    %10 = vector.shape_cast %9 : vector<1x1x32x32xbf16> to vector<32x32xbf16>
    %cst_16 = arith.constant dense<0.000000e+00> : vector<256x32xf32>
    %11 = tpu.matmul %8, %10, %cst_16 {dimension_numbers = #tpu.dot_dimension_numbers<[1], [0], [0], [1], [0, 0, 1, 1], [], []>} : vector<256x32xbf16>, vector<32x32xbf16>, vector<256x32xf32> -> vector<256x32xf32>
    %12 = arith.addf %5, %11 : vector<256x32xf32>
    %c0_17 = arith.constant 0 : index
    %c1_18 = arith.constant 1 : index
    %c0_19 = arith.constant 0 : index
    %13 = vector.load %arg8[%c0_17, %c1_18, %c0_19] : memref<18x18x32xf32, #tpu.memory_space<vmem>>, vector<16x16x32xf32>
    %14 = vector.shape_cast %13 : vector<16x16x32xf32> to vector<256x32xf32>
    %15 = arith.truncf %14 : vector<256x32xf32> to vector<256x32xbf16>
    %c0_20 = arith.constant 0 : index
    %c1_21 = arith.constant 1 : index
    %c0_22 = arith.constant 0 : index
    %c0_23 = arith.constant 0 : index
    %16 = vector.load %arg3[%c0_20, %c1_21, %c0_22, %c0_23] : memref<1x9x32x32xbf16, #tpu.memory_space<vmem>>, vector<1x1x32x32xbf16>
    %17 = vector.shape_cast %16 : vector<1x1x32x32xbf16> to vector<32x32xbf16>
    %cst_24 = arith.constant dense<0.000000e+00> : vector<256x32xf32>
    %18 = tpu.matmul %15, %17, %cst_24 {dimension_numbers = #tpu.dot_dimension_numbers<[1], [0], [0], [1], [0, 0, 1, 1], [], []>} : vector<256x32xbf16>, vector<32x32xbf16>, vector<256x32xf32> -> vector<256x32xf32>
    %19 = arith.addf %12, %18 : vector<256x32xf32>
    %c0_25 = arith.constant 0 : index
    %c2 = arith.constant 2 : index
    %c0_26 = arith.constant 0 : index
    %20 = vector.load %arg8[%c0_25, %c2, %c0_26] : memref<18x18x32xf32, #tpu.memory_space<vmem>>, vector<16x16x32xf32>
    %21 = vector.shape_cast %20 : vector<16x16x32xf32> to vector<256x32xf32>
    %22 = arith.truncf %21 : vector<256x32xf32> to vector<256x32xbf16>
    %c0_27 = arith.constant 0 : index
    %c2_28 = arith.constant 2 : index
    %c0_29 = arith.constant 0 : index
    %c0_30 = arith.constant 0 : index
    %23 = vector.load %arg3[%c0_27, %c2_28, %c0_29, %c0_30] : memref<1x9x32x32xbf16, #tpu.memory_space<vmem>>, vector<1x1x32x32xbf16>
    %24 = vector.shape_cast %23 : vector<1x1x32x32xbf16> to vector<32x32xbf16>
    %cst_31 = arith.constant dense<0.000000e+00> : vector<256x32xf32>
    %25 = tpu.matmul %22, %24, %cst_31 {dimension_numbers = #tpu.dot_dimension_numbers<[1], [0], [0], [1], [0, 0, 1, 1], [], []>} : vector<256x32xbf16>, vector<32x32xbf16>, vector<256x32xf32> -> vector<256x32xf32>
    %26 = arith.addf %19, %25 : vector<256x32xf32>
    %c1_32 = arith.constant 1 : index
    %c0_33 = arith.constant 0 : index
    %c0_34 = arith.constant 0 : index
    %27 = vector.load %arg8[%c1_32, %c0_33, %c0_34] : memref<18x18x32xf32, #tpu.memory_space<vmem>>, vector<16x16x32xf32>
    %28 = vector.shape_cast %27 : vector<16x16x32xf32> to vector<256x32xf32>
    %29 = arith.truncf %28 : vector<256x32xf32> to vector<256x32xbf16>
    %c0_35 = arith.constant 0 : index
    %c3 = arith.constant 3 : index
    %c0_36 = arith.constant 0 : index
    %c0_37 = arith.constant 0 : index
    %30 = vector.load %arg3[%c0_35, %c3, %c0_36, %c0_37] : memref<1x9x32x32xbf16, #tpu.memory_space<vmem>>, vector<1x1x32x32xbf16>
    %31 = vector.shape_cast %30 : vector<1x1x32x32xbf16> to vector<32x32xbf16>
    %cst_38 = arith.constant dense<0.000000e+00> : vector<256x32xf32>
    %32 = tpu.matmul %29, %31, %cst_38 {dimension_numbers = #tpu.dot_dimension_numbers<[1], [0], [0], [1], [0, 0, 1, 1], [], []>} : vector<256x32xbf16>, vector<32x32xbf16>, vector<256x32xf32> -> vector<256x32xf32>
    %33 = arith.addf %26, %32 : vector<256x32xf32>
    %c1_39 = arith.constant 1 : index
    %c1_40 = arith.constant 1 : index
    %c0_41 = arith.constant 0 : index
    %34 = vector.load %arg8[%c1_39, %c1_40, %c0_41] : memref<18x18x32xf32, #tpu.memory_space<vmem>>, vector<16x16x32xf32>
    %35 = vector.shape_cast %34 : vector<16x16x32xf32> to vector<256x32xf32>
    %36 = arith.truncf %35 : vector<256x32xf32> to vector<256x32xbf16>
    %c0_42 = arith.constant 0 : index
    %c4 = arith.constant 4 : index
    %c0_43 = arith.constant 0 : index
    %c0_44 = arith.constant 0 : index
    %37 = vector.load %arg3[%c0_42, %c4, %c0_43, %c0_44] : memref<1x9x32x32xbf16, #tpu.memory_space<vmem>>, vector<1x1x32x32xbf16>
    %38 = vector.shape_cast %37 : vector<1x1x32x32xbf16> to vector<32x32xbf16>
    %cst_45 = arith.constant dense<0.000000e+00> : vector<256x32xf32>
    %39 = tpu.matmul %36, %38, %cst_45 {dimension_numbers = #tpu.dot_dimension_numbers<[1], [0], [0], [1], [0, 0, 1, 1], [], []>} : vector<256x32xbf16>, vector<32x32xbf16>, vector<256x32xf32> -> vector<256x32xf32>
    %40 = arith.addf %33, %39 : vector<256x32xf32>
    %c1_46 = arith.constant 1 : index
    %c2_47 = arith.constant 2 : index
    %c0_48 = arith.constant 0 : index
    %41 = vector.load %arg8[%c1_46, %c2_47, %c0_48] : memref<18x18x32xf32, #tpu.memory_space<vmem>>, vector<16x16x32xf32>
    %42 = vector.shape_cast %41 : vector<16x16x32xf32> to vector<256x32xf32>
    %43 = arith.truncf %42 : vector<256x32xf32> to vector<256x32xbf16>
    %c0_49 = arith.constant 0 : index
    %c5 = arith.constant 5 : index
    %c0_50 = arith.constant 0 : index
    %c0_51 = arith.constant 0 : index
    %44 = vector.load %arg3[%c0_49, %c5, %c0_50, %c0_51] : memref<1x9x32x32xbf16, #tpu.memory_space<vmem>>, vector<1x1x32x32xbf16>
    %45 = vector.shape_cast %44 : vector<1x1x32x32xbf16> to vector<32x32xbf16>
    %cst_52 = arith.constant dense<0.000000e+00> : vector<256x32xf32>
    %46 = tpu.matmul %43, %45, %cst_52 {dimension_numbers = #tpu.dot_dimension_numbers<[1], [0], [0], [1], [0, 0, 1, 1], [], []>} : vector<256x32xbf16>, vector<32x32xbf16>, vector<256x32xf32> -> vector<256x32xf32>
    %47 = arith.addf %40, %46 : vector<256x32xf32>
    %c2_53 = arith.constant 2 : index
    %c0_54 = arith.constant 0 : index
    %c0_55 = arith.constant 0 : index
    %48 = vector.load %arg8[%c2_53, %c0_54, %c0_55] : memref<18x18x32xf32, #tpu.memory_space<vmem>>, vector<16x16x32xf32>
    %49 = vector.shape_cast %48 : vector<16x16x32xf32> to vector<256x32xf32>
    %50 = arith.truncf %49 : vector<256x32xf32> to vector<256x32xbf16>
    %c0_56 = arith.constant 0 : index
    %c6 = arith.constant 6 : index
    %c0_57 = arith.constant 0 : index
    %c0_58 = arith.constant 0 : index
    %51 = vector.load %arg3[%c0_56, %c6, %c0_57, %c0_58] : memref<1x9x32x32xbf16, #tpu.memory_space<vmem>>, vector<1x1x32x32xbf16>
    %52 = vector.shape_cast %51 : vector<1x1x32x32xbf16> to vector<32x32xbf16>
    %cst_59 = arith.constant dense<0.000000e+00> : vector<256x32xf32>
    %53 = tpu.matmul %50, %52, %cst_59 {dimension_numbers = #tpu.dot_dimension_numbers<[1], [0], [0], [1], [0, 0, 1, 1], [], []>} : vector<256x32xbf16>, vector<32x32xbf16>, vector<256x32xf32> -> vector<256x32xf32>
    %54 = arith.addf %47, %53 : vector<256x32xf32>
    %c2_60 = arith.constant 2 : index
    %c1_61 = arith.constant 1 : index
    %c0_62 = arith.constant 0 : index
    %55 = vector.load %arg8[%c2_60, %c1_61, %c0_62] : memref<18x18x32xf32, #tpu.memory_space<vmem>>, vector<16x16x32xf32>
    %56 = vector.shape_cast %55 : vector<16x16x32xf32> to vector<256x32xf32>
    %57 = arith.truncf %56 : vector<256x32xf32> to vector<256x32xbf16>
    %c0_63 = arith.constant 0 : index
    %c7 = arith.constant 7 : index
    %c0_64 = arith.constant 0 : index
    %c0_65 = arith.constant 0 : index
    %58 = vector.load %arg3[%c0_63, %c7, %c0_64, %c0_65] : memref<1x9x32x32xbf16, #tpu.memory_space<vmem>>, vector<1x1x32x32xbf16>
    %59 = vector.shape_cast %58 : vector<1x1x32x32xbf16> to vector<32x32xbf16>
    %cst_66 = arith.constant dense<0.000000e+00> : vector<256x32xf32>
    %60 = tpu.matmul %57, %59, %cst_66 {dimension_numbers = #tpu.dot_dimension_numbers<[1], [0], [0], [1], [0, 0, 1, 1], [], []>} : vector<256x32xbf16>, vector<32x32xbf16>, vector<256x32xf32> -> vector<256x32xf32>
    %61 = arith.addf %54, %60 : vector<256x32xf32>
    %c2_67 = arith.constant 2 : index
    %c2_68 = arith.constant 2 : index
    %c0_69 = arith.constant 0 : index
    %62 = vector.load %arg8[%c2_67, %c2_68, %c0_69] : memref<18x18x32xf32, #tpu.memory_space<vmem>>, vector<16x16x32xf32>
    %63 = vector.shape_cast %62 : vector<16x16x32xf32> to vector<256x32xf32>
    %64 = arith.truncf %63 : vector<256x32xf32> to vector<256x32xbf16>
    %c0_70 = arith.constant 0 : index
    %c8 = arith.constant 8 : index
    %c0_71 = arith.constant 0 : index
    %c0_72 = arith.constant 0 : index
    %65 = vector.load %arg3[%c0_70, %c8, %c0_71, %c0_72] : memref<1x9x32x32xbf16, #tpu.memory_space<vmem>>, vector<1x1x32x32xbf16>
    %66 = vector.shape_cast %65 : vector<1x1x32x32xbf16> to vector<32x32xbf16>
    %cst_73 = arith.constant dense<0.000000e+00> : vector<256x32xf32>
    %67 = tpu.matmul %64, %66, %cst_73 {dimension_numbers = #tpu.dot_dimension_numbers<[1], [0], [0], [1], [0, 0, 1, 1], [], []>} : vector<256x32xbf16>, vector<32x32xbf16>, vector<256x32xf32> -> vector<256x32xf32>
    %68 = arith.addf %61, %67 : vector<256x32xf32>
    %c0_74 = arith.constant 0 : index
    %c0_75 = arith.constant 0 : index
    %c0_76 = arith.constant 0 : index
    %69 = vector.load %arg4[%c0_74, %c0_75, %c0_76] : memref<1x1x32xf32, #tpu.memory_space<vmem>>, vector<1x1x32xf32>
    %70 = vector.shape_cast %69 : vector<1x1x32xf32> to vector<1x32xf32>
    %71 = vector.broadcast %70 : vector<1x32xf32> to vector<256x32xf32>
    %72 = arith.addf %68, %71 : vector<256x32xf32>
    %cst_77 = arith.constant 0.000000e+00 : f32
    %73 = vector.broadcast %cst_77 : f32 to vector<256x32xf32>
    %74 = arith.maximumf %72, %73 : vector<256x32xf32>
    %75 = arith.truncf %74 : vector<256x32xf32> to vector<256x32xbf16>
    %c0_78 = arith.constant 0 : index
    %c0_79 = arith.constant 0 : index
    %c0_80 = arith.constant 0 : index
    %76 = vector.load %arg5[%c0_78, %c0_79, %c0_80] : memref<1x32x128xbf16, #tpu.memory_space<vmem>>, vector<1x32x128xbf16>
    %77 = vector.shape_cast %76 : vector<1x32x128xbf16> to vector<32x128xbf16>
    %cst_81 = arith.constant dense<0.000000e+00> : vector<256x128xf32>
    %78 = tpu.matmul %75, %77, %cst_81 {dimension_numbers = #tpu.dot_dimension_numbers<[1], [0], [0], [1], [0, 0, 1, 1], [], []>} : vector<256x32xbf16>, vector<32x128xbf16>, vector<256x128xf32> -> vector<256x128xf32>
    %c0_82 = arith.constant 0 : index
    %c0_83 = arith.constant 0 : index
    %c0_84 = arith.constant 0 : index
    %79 = vector.load %arg6[%c0_82, %c0_83, %c0_84] : memref<1x1x128xf32, #tpu.memory_space<vmem>>, vector<1x1x128xf32>
    %80 = vector.shape_cast %79 : vector<1x1x128xf32> to vector<1x128xf32>
    %81 = vector.broadcast %80 : vector<1x128xf32> to vector<256x128xf32>
    %82 = arith.addf %78, %81 : vector<256x128xf32>
    %c0_85 = arith.constant 0 : index
    %c0_86 = arith.constant 0 : index
    %c0_87 = arith.constant 0 : index
    %c0_88 = arith.constant 0 : index
    %83 = vector.load %arg7[%c0_85, %c0_86, %c0_87, %c0_88] : memref<1x1x256x128xf32, #tpu.memory_space<vmem>>, vector<1x1x256x128xf32>
    %84 = vector.shape_cast %83 : vector<1x1x256x128xf32> to vector<256x128xf32>
    %85 = vector.shape_cast %82 : vector<256x128xf32> to vector<1x1x256x128xf32>
    tpu.vector_store %arg7[%c0_85, %c0_86, %c0_87, %c0_88], %85 {strides = array<i32>} : memref<1x1x256x128xf32, #tpu.memory_space<vmem>>, vector<1x1x256x128xf32>,
    return
  }
  func.func @transform_0(%arg0: i32, %arg1: i32) -> (i32, i32, i32, i32) {
    %c0_i32 = arith.constant 0 : i32
    %c0_i32_0 = arith.constant 0 : i32
    %c0_i32_1 = arith.constant 0 : i32
    %c0_i32_2 = arith.constant 0 : i32
    return %arg0, %c0_i32, %c0_i32_0, %c0_i32_1 : i32, i32, i32, i32
  }
  func.func @transform_1(%arg0: i32, %arg1: i32) -> (i32, i32, i32, i32) {
    %c0_i32 = arith.constant 0 : i32
    %c0_i32_0 = arith.constant 0 : i32
    %c0_i32_1 = arith.constant 0 : i32
    %c0_i32_2 = arith.constant 0 : i32
    return %arg1, %c0_i32, %c0_i32_0, %c0_i32_1 : i32, i32, i32, i32
  }
  func.func @transform_2(%arg0: i32, %arg1: i32) -> (i32, i32, i32) {
    %c0_i32 = arith.constant 0 : i32
    %c0_i32_0 = arith.constant 0 : i32
    %c0_i32_1 = arith.constant 0 : i32
    return %arg1, %c0_i32, %c0_i32_0 : i32, i32, i32
  }
  func.func @transform_3(%arg0: i32, %arg1: i32) -> (i32, i32, i32) {
    %c0_i32 = arith.constant 0 : i32
    %c0_i32_0 = arith.constant 0 : i32
    %c0_i32_1 = arith.constant 0 : i32
    return %arg1, %c0_i32, %c0_i32_0 : i32, i32, i32
  }
  func.func @transform_4(%arg0: i32, %arg1: i32) -> (i32, i32, i32) {
    %c0_i32 = arith.constant 0 : i32
    %c0_i32_0 = arith.constant 0 : i32
    %c0_i32_1 = arith.constant 0 : i32
    return %arg1, %c0_i32, %c0_i32_0 : i32, i32, i32
  }
  func.func @transform_5(%arg0: i32, %arg1: i32) -> (i32, i32, i32, i32) {
    %c0_i32 = arith.constant 0 : i32
    %c0_i32_0 = arith.constant 0 : i32
    %c0_i32_1 = arith.constant 0 : i32
    return %arg1, %arg0, %c0_i32, %c0_i32_0 : i32, i32, i32, i32
  }
}

</mosaic_0001>

<bundles_post_ra>
// kernel: tpu_custom_call.1
= control target key start
LH: loop header
LB: loop body
LE: loop exit
PB: predicated region body
PF: predicated region fallthrough
CT: control target
= control target key end

     0   :  { %s5046_s0 = inlined_call_operand.hbm [shape: f32[2,16,16,32], index: 0, kind: input, shape index: {}]   ;;  %s5047_s1 = inlined_call_operand.hbm [shape: bf16[5,9,32,32], index: 1, kind: input, shape index: {}]   ;;  %s5048_s2 = inlined_call_operand.hbm [shape: f32[5,1,32], index: 2, kind: input, shape index: {}]   ;;  %s5049_s3 = inlined_call_operand.hbm [shape: bf16[5,32,128], index: 3, kind: input, shape index: {}]   ;;  %s5050_s4 = inlined_call_operand.hbm [shape: f32[5,1,128], index: 4, kind: input, shape index: {}]   ;;  %s5051_s5 = inlined_call_operand.hbm [shape: f32[5,2,256,128], index: 5, kind: output, shape index: {}]  }
   0x1   :  { %5066 = sst [smem:[#allocation43_spill]] %s5046_s0 }
   0x2   :  { %5067 = sst [smem:[#allocation44_spill]] %s5047_s1 }
   0x3   :  { %5068 = sst [smem:[#allocation45_spill]] %s5049_s3 }
   0x4   :  { %5069 = sst [smem:[#allocation46_spill]] %s5050_s4 }
   0x5   :  { %5070 = sst [smem:[#allocation47_spill]] %s5051_s5 }
   0x6   :  { %10 = vsyncpa [#allocation4], 0 }
   0x7   :  { %12 = vsyncpa [#allocation4 + $0x1], 0 }
   0x8   :  { %13 = vsyncpa [#allocation7], 0 }
   0x9   :  { %15 = vsyncpa [#allocation7 + $0x1], 0 }
   0xa   :  { %16 = vsyncpa [#allocation10], 0 }
   0xb   :  { %18 = vsyncpa [#allocation10 + $0x1], 0 }
   0xc   :  { %19 = vsyncpa [#allocation5], 0 }
   0xd   :  { %21 = vsyncpa [#allocation5 + $0x1], 0  ;;  %s3847_s18 = smov 0   ;;  %s3849_s19 = smov 0  }
   0xe   :  { %s3851_s20 = smov 0   ;;  %s3853_s21 = smov 0  }
   0xf   :  { %s3855_s22 = smov 0   ;;  %s3857_s23 = smov 0  }
  0x10   :  { %s3859_s24 = smov 0   ;;  %s3861_s25 = smov 0  }
  0x11   :  { %s3863_s26 = smov 0   ;;  %s3865_s27 = smov 0  }
  0x12   :  { %s3867_s28 = smov 0   ;;  %s3869_s29 = smov 0  }
  0x13   :  { %s3871_s30 = smov 0   ;;  %s3873_s6 = smov 0  }
  0x14 LB: > { %5071 = sst [smem:[#allocation17_spill]] %s3764_s20  ;;  %p54_p0 = scmp.eq.s32.totalorder %s3808_s6, 0  ;;  %s3808_s6 = sphi %s3873_s6, %s27_s6   ;;  %s3804_s30 = sphi %s3871_s30, %s5161_s30   ;;  %s3800_s29 = sphi %s3869_s29, %s5160_s29   ;;  %s3796_s28 = sphi %s3867_s28, %s5147_s28   ;;  %s3792_s27 = sphi %s3865_s27, %s5159_s27   ;;  %s3788_s26 = sphi %s3863_s26, %s5158_s26   ;;  %s3784_s25 = sphi %s3861_s25, %s5157_s25   ;;  %s3780_s24 = sphi %s3859_s24, %s5156_s24   ;;  %s3776_s23 = sphi %s3857_s23, %s5155_s23   ;;  %s3772_s22 = sphi %s3855_s22, %s5154_s22   ;;  %s3768_s21 = sphi %s3853_s21, %s5153_s21   ;;  %s3764_s20 = sphi %s3851_s20, %s5142_s20   ;;  %s3760_s19 = sphi %s3849_s19, %s5152_s19   ;;  %s3756_s18 = sphi %s3847_s18, %s5151_s18  }
  0x15   : > { %5072 = sst [smem:[#allocation18_spill]] %s3776_s23  ;;  %p79_p1 = scmp.ne.s32.totalorder %s3776_s23, %s3772_s22 }
  0x16   : > { %5073 = sst [smem:[#allocation19_spill]] %s3788_s26  ;;  %p85_p2 = scmp.ne.s32.totalorder %s3772_s22, %s3768_s21 }
  0x17   : > { %5074 = sst [smem:[#allocation20_spill]] %s3792_s27  ;;  %p5057_p3 = scmp.lt.s32.totalorder %s3808_s6, 10 }
  0x18   : > { %5075 = sst [smem:[#allocation21_spill]] %s3796_s28  ;;  %p81_p4 = por %p79_p1, %p54_p0 }
  0x19   : > { %5076 = sst [smem:[#allocation22_spill]] %s3804_s30  ;;  %s237_s8 = sand.u32 1, %s3808_s6  }
  0x1a   : > { %s3928_s9 = sand.u32 1, %s3776_s23   ;;  %p3933_p5 = pnand %p5057_p3, %p81_p4 }
  0x1b   : > { %s3346_s10 = smul.u32 144, %s3928_s9  ;;  %s5078_s1 = sld [smem:[#allocation44_spill]] }
  0x1c   : > { %s3347_s12 = smul.u32 144, %s3800_s29  ;;  %s3941_s5 = scalar_lea.sflag [#allocation7], %s237_s8 }
  0x1d   : > { %s241_s16 = scalar_lea.vmem [#allocation6], %s3346_s10  ;;  %s3810_s27 = smov 64  }
  0x1e   : > { %s249_s17 = sshll.u32 %s241_s16, 4  ;;  %s3811_s28 = smov 4   ;;  %s250_s17 = int_to_ptr.vmem [resolvable:$true] %s249_s17 }
  0x1f   : > { %p3038_p6 = scmp.ge.s32.totalorder %s3808_s6, 1  ;;  %p313_p7 = scmp.lt.s32.totalorder %s3808_s6, 11 }
  0x20   : > { %s3321_s13 = sshll.u32 %s3800_s29, 4  ;;  %s5081_s3 = sld [smem:[#allocation45_spill]] }
  0x21   : > { %s246_s15 = scalar_lea.hbm %s5078_s1, %s3347_s12  ;;  %s3035_s12 = sshll.u32 %s3928_s9, 4 }
  0x22   : > { %s247_s7 = sshll.u32 %s246_s15, 4  ;;  %p3949_p8 = pnand %p3038_p6, %p313_p7  ;;  %s248_s7 = int_to_ptr.hbm [resolvable:$true] %s247_s7 }
  0x23   : > { %3367 = dma.hbm_to_vmem [thread:$0]  (!%p3933_p5), %s248_s7, 2304, %s250_s17, %s3941_s5, %s3810_s27, %s3810_s27, %s3811_s28  }
  0x24   : > { %s5079_s10 = scalar_select %p3949_p8, 1, 0 }
  0x25   : > { %s280_s14 = scalar_lea.vmem [#allocation9], %s3035_s12  ;;  %s3957_s4 = scalar_lea.sflag [#allocation10], %s237_s8 }
  0x26   : > { %5080 = sst [smem:[#allocation23_spill]] %s5079_s10  ;;  %s288_s15 = sshll.u32 %s280_s14, 4  ;;  %s289_s15 = int_to_ptr.vmem [resolvable:$true] %s288_s15 }
  0x27   : > { %s285_s7 = scalar_lea.hbm %s5081_s3, %s3321_s13  ;;  %s3963_s10 = sadd.s32 4294967295, %s3808_s6  }
  0x28   : > { %s286_s17 = sshll.u32 %s285_s7, 4  ;;  %s3028_s12 = sadd.s32 4294967294, %s3808_s6   ;;  %s287_s17 = int_to_ptr.hbm [resolvable:$true] %s286_s17 }
  0x29   : > { %3373 = dma.hbm_to_vmem [thread:$0]  (!%p3933_p5), %s287_s17, 256, %s289_s15, %s3957_s4, %s3810_s27, %s3810_s27, %s3811_s28  }
  0x2a   : > { %s36_s14 = sadd.s32 1, %s3800_s29  ;;  %s39_s1 = sadd.s32 1, %s3804_s30 }
  0x2b   : > { %p37_p9 = scmp.ge.s32.totalorder %s36_s14, 5  ;;  %s46_s13 = sadd.s32 1, %s3788_s26 }
  0x2c   : > { %p53_p10 = scmp.ne.s32.totalorder %s3788_s26, %s3784_s25  ;;  %p59_p11 = scmp.ne.s32.totalorder %s3784_s25, %s3780_s24 }
  0x2d   : > { %s5163_s14 = smov (%p37_p9, %s36_s14), 0  ;;  %s5165_s1 = smov (!%p37_p9, %s39_s1), %s3804_s30 }
  0x2e   : > { %5082 = sst [smem:[#allocation24_spill]] %s5163_s14  ;;  %p3978_p12 = por %p54_p0, %p53_p10 }
  0x2f   : > { %p60_p13 = scmp.eq.s32.totalorder %s3963_s10, 0  ;;  %p41_p1 = scmp.ge.s32.totalorder %s5165_s1, 2 }
  0x30   : > { %s69_s24 = ssub.s32 %s3800_s29, %s5163_s14  ;;  %s5087_s8 = sadd.s32 1, %s3776_s23 }
  0x31   : > { %p3985_p4 = por %p60_p13, %p59_p11  ;;  %p70_p6 = scmp.eq.s32.totalorder %s69_s24, 0 }
  0x32   : > { %s5167_s1 = smov (%p41_p1, %s5165_s1), 0  ;;  %p4001_p0 = por %p85_p2, %p60_p13 }
  0x33   : > { %s5084_s28 = scalar_select %p3985_p4, 1, 0 }
  0x34   : > { %5086 = sst [smem:[#allocation26_spill]] %s5167_s1  ;;  %s43_s16 = ssub.s32 %s3804_s30, %s5167_s1 }
  0x35   : > { %5085 = sst [smem:[#allocation25_spill]] %s5084_s28  ;;  %p44_p7 = scmp.eq.s32.totalorder %s43_s16, 0 }
  0x36   : > { %s3994_s15 = scalar_select %p70_p6, %s3776_s23, %s5087_s8  }
  0x37   : > { %s175_s17 = sor.u32 %s69_s24, %s43_s16  ;;  %s178_s3 = sadd.s32 1, %s3764_s20 }
  0x38   : > { %5088 = sst [smem:[#allocation27_spill]] %s3994_s15  ;;  %p176_p9 = scmp.eq.s32.totalorder %s175_s17, 0 }
  0x39   : > { %s4007_s14 = scalar_select %p44_p7, %s3788_s26, %s46_s13  }
  0x3a   : > { %s4010_s28 = scalar_select %p176_p9, %s3764_s20, %s178_s3  }
  0x3b   : > { %5090 = sst [smem:[#allocation28_spill]] %s4007_s14  ;;  %p188_p10 = scmp.ne.s32.totalorder %s3764_s20, %s3760_s19 }
  0x3c   : > { %5091 = sst [smem:[#allocation29_spill]] %s4010_s28  ;;  %p189_p11 = scmp.eq.s32.totalorder %s3963_s10, 9 }
  0x3d   : > { %p194_p1 = scmp.ne.s32.totalorder %s3760_s19, %s3756_s18  ;;  %p195_p6 = scmp.eq.s32.totalorder %s3028_s12, 9 }
  0x3e   : > { %p4017_p3 = por %p189_p11, %p188_p10  ;;  %s215_s8 = sand.u32 1, %s3788_s26  }
  0x3f   : > { %p4022_p2 = por %p195_p6, %p194_p1  ;;  %s3031_s13 = sshll.u32 %s215_s8, 8 }
  0x40   : > { %s3320_s3 = sshll.u32 %s3804_s30, 8  ;;  %s5095_s0 = sld [smem:[#allocation43_spill]] }
  0x41   : > { %s5093_s24 = scalar_select %p4022_p2, 1, 0 }
  0x42   : > { %s219_s12 = scalar_lea.vmem [#allocation3], %s3031_s13  ;;  %p5096_p13 = scmp.lt.s32.totalorder %s3808_s6, 10 }
  0x43   : > { %5094 = sst [smem:[#allocation30_spill]] %s5093_s24  ;;  %s227_s15 = sshll.u32 %s219_s12, 4  ;;  %s228_s15 = int_to_ptr.vmem [resolvable:$true] %s227_s15 }
  0x44   : > { %p3362_p7 = pnand %p5096_p13, %p3978_p12  ;;  %s265_s30 = scalar_lea.hbm %s5048_s2, %s3800_s29 }
  0x45   : > { %s216_s28 = scalar_lea.sflag [#allocation4], %s215_s8  ;;  %s267_s16 = sshll.u32 %s265_s30, 4  ;;  %s268_s16 = int_to_ptr.hbm [resolvable:$true] %s267_s16 }
  0x46   : > { %s224_s1 = scalar_lea.hbm %s5095_s0, %s3320_s3  ;;  %s3812_s3 = smov 128  }
  0x47   : > { %s225_s14 = sshll.u32 %s224_s1, 4  ;;  %s3813_s1 = smov 8   ;;  %s226_s14 = int_to_ptr.hbm [resolvable:$true] %s225_s14 }
  0x48   : > { %3364 = dma.hbm_to_vmem [thread:$0]  (!%p3362_p7), %s226_s14, 4096, %s228_s15, %s216_s28, %s3812_s3, %s3812_s3, %s3813_s1  }
  0x49   : > { %s262_s13 = scalar_lea.vmem [#allocation8], %s3928_s9  ;;  %s5097_s0 = sld [smem:[#allocation46_spill]] }
  0x4a   : > { %s269_s17 = sshll.u32 %s262_s13, 4  ;;  %s301_s23 = scalar_lea.vmem [#allocation11], %s3928_s9  ;;  %s270_s17 = int_to_ptr.vmem [resolvable:$true] %s269_s17 }
  0x4b   : > { %3370 = dma.hbm_to_vmem [thread:$0]  (!%p3933_p5), %s268_s16, 16, %s270_s17, %s3941_s5  }
  0x4c   : > { %s308_s26 = sshll.u32 %s301_s23, 4  ;;  %s309_s26 = int_to_ptr.vmem [resolvable:$true] %s308_s26 }
  0x4d   : > { %317 = sbr.rel (%p3949_p8) target bundleno = 1062 (0x426), region = 40 }
  0x4f   : > { %s304_s20 = scalar_lea.hbm %s5097_s0, %s3800_s29 }
  0x50   : > { %s306_s24 = sshll.u32 %s304_s20, 4  ;;  %s307_s24 = int_to_ptr.hbm [resolvable:$true] %s306_s24 }
  0x51   : > { %3376 = dma.hbm_to_vmem [thread:$0]  (!%p3933_p5), %s307_s24, 16, %s309_s26, %s3957_s4  }
  0x52   : > { %s319_s14 = sand.u32 1, %s3784_s25  }
  0x53   : > { %s3039_s28 = sshll.u32 %s319_s14, 8  ;;  %s320_s15 = scalar_lea.sflag [#allocation4], %s319_s14 }
  0x54   : > { %s4053_s5 = scalar_lea.vmem [#allocation3], %s3039_s28 }
  0x55   : > { %3739 = dma.done.wait (%p3985_p4), %s320_s15, 4096  }
  0x56   : > { %3741 = vsyncadd (%p3985_p4), %s320_s15, 4294963200  ;;  %s329_s0 = sand.u32 1, %s3963_s10   ;;  %s4061_s4 = sand.u32 1, %s3772_s22  }
  0x57   : > { %s3348_s20 = smul.u32 144, %s4061_s4  ;;  %s330_s9 = scalar_lea.sflag [#allocation7], %s329_s0 }
  0x59   : > { %s4064_s11 = scalar_lea.vmem [#allocation6], %s3348_s20 }
  0x5a   : > { %3743 = dma.done.wait (%p4001_p0), %s330_s9, 2320  }
  0x5b   : > { %3745 = vsyncadd (%p4001_p0), %s330_s9, 4294964976  ;;  %s3040_s24 = sshll.u32 %s4061_s4, 4  ;;  %s342_s3 = scalar_lea.vmem [#allocation8], %s4061_s4 }
  0x5c   : > { %s349_s1 = scalar_lea.sflag [#allocation10], %s329_s0  ;;  %s4072_s16 = scalar_lea.vmem [#allocation9], %s3040_s24 }
  0x5d   : > { %3747 = dma.done.wait (%p4001_p0), %s349_s1, 272  }
  0x5e   : > { %3749 = vsyncadd (%p4001_p0), %s349_s1, 4294967024  ;;  %vm408_vm0 = vcmask 261120   ;;  %vm411_vm1 = vcmask 254976   ;;  %v3814_v0 = vmov 0.0   ;;  %v3325_v1 = vld [vmem:[%s4064_s11 + $0x18] sm:$0xff]  ;;  %v3323_v2 = vld [vmem:[%s4064_s11 + $0x8] sm:$0xff] }
  0x5f   : > { %434 = vst.msk [vmem:[#allocation2 + $0xc0] sm:$0xff] %vm408_vm0, %v3814_v0  ;;  %v478_v3 = vld [vmem:[%s4053_s5 + $0x70] sm:$0xff]  ;;  %v479_v4 = vld [vmem:[%s4053_s5 + $0x78] sm:$0xff]  ;;  %3342 = vmatpush.bf16.msra.mxu2 %v3325_v1  ;;  %3344 = vmatpush.bf16.msra.mxu3 %v3323_v2  ;;  %v480_v22 = vld [vmem:[%s4053_s5 + $0x80] sm:$0xff]  ;;  %s361_s10 = scalar_lea.vmem [#allocation11], %s4061_s4  ;;  %s404_s7 = sand.u32 1, %s3760_s19  }
  0x60   : > { %435 = vst.msk [vmem:[#allocation2 + $0xc8] sm:$0xff] %vm408_vm0, %v3814_v0  ;;  %v3324_v5 = vld [vmem:[%s4064_s11 + $0x10] sm:$0xff]  ;;  %v3322_v6 = vld [vmem:[%s4064_s11] sm:$0xff]  ;;  %700 = vmatpush.bf16.msra.mxu0 %v3325_v1  ;;  %849 = vmatpush.bf16.msra.mxu1 %v3323_v2  ;;  %v3327_v19 = vld [vmem:[%s4064_s11 + $0x28] sm:$0xff]  ;;  %s3041_s13 = sshll.u32 %s404_s7, 8  ;;  %s5136_s27 = sld [smem:[#allocation21_spill]] }
  0x61   : > { %436 = vst.msk [vmem:[#allocation2 + $0xd0] sm:$0x3] %vm411_vm1, %v3814_v0  ;;  %v3329_v20 = vld [vmem:[%s4064_s11 + $0x38] sm:$0xff]  ;;  %v3331_v21 = vld [vmem:[%s4064_s11 + $0x48] sm:$0xff]  ;;  %v464_v24 = vld [vmem:[%s4053_s5] sm:$0xff]  ;;  %s4869_s17 = scalar_lea.vmem [#allocation12], %s3041_s13 }
  0x62   : > { %409 = vst.msk [vmem:[#allocation2] sm:$0xff] %vm408_vm0, %v3814_v0  ;;  %v481_v23 = vld [vmem:[%s4053_s5 + $0x88] sm:$0xff]  ;;  %v482_v26 = vld [vmem:[%s4053_s5 + $0x90] sm:$0xff]  ;;  %v483_v27 = vld [vmem:[%s4053_s5 + $0x98] sm:$0xff]  ;;  %s5137_s12 = sld [smem:[#allocation20_spill]]  ;;  %s2859_s0 = sshll.u32 %s4869_s17, 4  ;;  %s2860_s0 = int_to_ptr.vmem [resolvable:$true] %s2859_s0 }
  0x63   : > { %410 = vst.msk [vmem:[#allocation2 + $0x8] sm:$0xff] %vm408_vm0, %v3814_v0  ;;  %3343 = vmatpush.bf16.msra.mxu2 %v3324_v5  ;;  %3345 = vmatpush.bf16.msra.mxu3 %v3322_v6  ;;  %v465_v25 = vld [vmem:[%s4053_s5 + $0x8] sm:$0xff]  ;;  %v466_v28 = vld [vmem:[%s4053_s5 + $0x10] sm:$0xff]  ;;  %v467_v29 = vld [vmem:[%s4053_s5 + $0x18] sm:$0xff]  ;;  %s5138_s15 = sld [smem:[#allocation47_spill]]  ;;  %s2845_s20 = scalar_lea.sflag [#allocation5], %s404_s7 }
  0x64   : > { %412 = vst.msk [vmem:[#allocation2 + $0x10] sm:$0x3] %vm411_vm1, %v3814_v0  ;;  %701 = vmatpush.bf16.msra.mxu0 %v3324_v5  ;;  %850 = vmatpush.bf16.msra.mxu1 %v3322_v6  ;;  %v484_v30 = vld [vmem:[%s4053_s5 + $0xa0] sm:$0xff]  ;;  %v485_v31 = vld [vmem:[%s4053_s5 + $0xa8] sm:$0xff]  ;;  %v486_v46 = vld [vmem:[%s4053_s5 + $0xb0] sm:$0xff] }
  0x65   : > { %413 = vst.msk [vmem:[#allocation2 + $0x18] sm:$0xff] %vm408_vm0, %v3814_v0  ;;  %v468_v34 = vld [vmem:[%s4053_s5 + $0x20] sm:$0xff]  ;;  %v469_v37 = vld [vmem:[%s4053_s5 + $0x28] sm:$0xff]  ;;  %v487_v47 = vld [vmem:[%s4053_s5 + $0xb8] sm:$0xff] }
  0x66   : > { %414 = vst.msk [vmem:[#allocation2 + $0x20] sm:$0xff] %vm408_vm0, %v3814_v0  ;;  %v470_v48 = vld [vmem:[%s4053_s5 + $0x30] sm:$0xff]  ;;  %v471_v50 = vld [vmem:[%s4053_s5 + $0x38] sm:$0xff]  ;;  %v488_v1 = vld [vmem:[%s4053_s5 + $0xc0] sm:$0xff]  ;;  %s3315_s23 = sshll.u32 %s5136_s27, 5 }
  0x67   : > { %511 = vst.msk [vmem:[#allocation2 + $0xc1] sm:$0xff] %vm408_vm0, %v478_v3  ;;  %1051 = vmatpush.bf16.msrb.mxu2 %v3327_v19  ;;  %1285 = vmatpush.bf16.msrb.mxu3 %v3329_v20  ;;  %v3326_v62 = vld [vmem:[%s4064_s11 + $0x20] sm:$0xff]  ;;  %v3328_v63 = vld [vmem:[%s4064_s11 + $0x30] sm:$0xff]  ;;  %v489_v2 = vld [vmem:[%s4053_s5 + $0xc8] sm:$0xff] }
  0x68   : > { %512 = vst.msk [vmem:[#allocation2 + $0xc9] sm:$0xff] %vm408_vm0, %v479_v4  ;;  %1519 = vmatpush.bf16.msrb.mxu0 %v3331_v21  ;;  %v472_v3 = vld [vmem:[%s4053_s5 + $0x40] sm:$0xff]  ;;  %v473_v4 = vld [vmem:[%s4053_s5 + $0x48] sm:$0xff]  ;;  %v490_v19 = vld [vmem:[%s4053_s5 + $0xd0] sm:$0xff]  ;;  %s3316_s26 = sshll.u32 %s5137_s12, 6 }
  0x69   : > { %415 = vst.msk [vmem:[#allocation2 + $0x28] sm:$0x3] %vm411_vm1, %v3814_v0  ;;  %v529_v7 = vld [vmem:[#allocation2] sm:$0xff]  ;;  %v491_v20 = vld [vmem:[%s4053_s5 + $0xd8] sm:$0xff]  ;;  %s2856_s8 = sadd.s32 %s3316_s26, %s3315_s23  ;;  %s3674_s1 = scalar_lea.hbm %s5138_s15, 2560 }
  0x6a   : > { %416 = vst.msk [vmem:[#allocation2 + $0x30] sm:$0xff] %vm408_vm0, %v3814_v0  ;;  %v581_v8 = vld [vmem:[#allocation2 + $0x1] sm:$0xff]  ;;  %s3317_s30 = sshll.u32 %s2856_s8, 3 }
  0x6b   : > { %v530_v9 = vld [vmem:[#allocation2 + $0x8] sm:$0xff]  ;;  %417 = vst.msk [vmem:[#allocation2 + $0x38] sm:$0xff] %vm408_vm0, %v3814_v0  ;;  %1052 = vmatpush.bf16.msrb.mxu2 %v3326_v62  ;;  %1286 = vmatpush.bf16.msrb.mxu3 %v3328_v63  ;;  %v474_v21 = vld [vmem:[%s4053_s5 + $0x50] sm:$0xff] }
  0x6c   : > { %v582_v10 = vld [vmem:[#allocation2 + $0x9] sm:$0xff]  ;;  %v561_v11 = vpack.c.bf16 %v530_v9, %v529_v7  ;;  %418 = vst.msk [vmem:[#allocation2 + $0x40] sm:$0x3] %vm411_vm1, %v3814_v0 }
  0x6d   : > { %v613_v12 = vpack.c.bf16 %v582_v10, %v581_v8  ;;  %419 = vst.msk [vmem:[#allocation2 + $0x48] sm:$0xff] %vm408_vm0, %v3814_v0 }
  0x6e   : > { %v597_v13 = vld [vmem:[#allocation2 + $0xc1] sm:$0xff]  ;;  %420 = vst.msk [vmem:[#allocation2 + $0x50] sm:$0xff] %vm408_vm0, %v3814_v0  ;;  %3078 = vmatmul.msk.bf16.vlgmr.msra.gmra.mxu1 %vm408_vm0, %v561_v11 }
  0x6f   : > { %v545_v14 = vld [vmem:[#allocation2 + $0xc0] sm:$0xff]  ;;  %v598_v15 = vld [vmem:[#allocation2 + $0xc9] sm:$0xff]  ;;  %421 = vst.msk [vmem:[#allocation2 + $0x58] sm:$0x3] %vm411_vm1, %v3814_v0  ;;  %3054 = vmatmul.msk.bf16.vlgmr.msra.gmra.mxu0 %vm408_vm0, %v613_v12 }
  0x70   : > { %v546_v16 = vld [vmem:[#allocation2 + $0xc8] sm:$0xff]  ;;  %v4118_v17 = vpack.c.bf16 %v598_v15, %v597_v13  ;;  %422 = vst.msk [vmem:[#allocation2 + $0x60] sm:$0xff] %vm408_vm0, %v3814_v0 }
  0x71   : > { %v4122_v18 = vpack.c.bf16 %v546_v16, %v545_v14  ;;  %423 = vst.msk [vmem:[#allocation2 + $0x68] sm:$0xff] %vm408_vm0, %v3814_v0 }
  0x72   : > { %3062 = vmatmul.msk.bf16.vlgmr.msra.gmra.mxu2 %vm408_vm0, %v4118_v17  ;;  %424 = vst.msk [vmem:[#allocation2 + $0x70] sm:$0x3] %vm411_vm1, %v3814_v0 }
  0x73   : > { %3086 = vmatmul.msk.bf16.vlgmr.msra.gmra.mxu3 %vm408_vm0, %v4122_v18  ;;  %425 = vst.msk [vmem:[#allocation2 + $0x78] sm:$0xff] %vm408_vm0, %v3814_v0 }
  0x74   : > { %426 = vst.msk [vmem:[#allocation2 + $0x80] sm:$0xff] %vm408_vm0, %v3814_v0 }
  0x75   : > { %427 = vst.msk [vmem:[#allocation2 + $0x88] sm:$0x3] %vm411_vm1, %v3814_v0 }
  0x76   : > { %428 = vst.msk [vmem:[#allocation2 + $0x90] sm:$0xff] %vm408_vm0, %v3814_v0 }
  0x77   : > { %429 = vst.msk [vmem:[#allocation2 + $0x98] sm:$0xff] %vm408_vm0, %v3814_v0 }
  0x78   : > { %430 = vst.msk [vmem:[#allocation2 + $0xa0] sm:$0x3] %vm411_vm1, %v3814_v0 }
  0x79   : > { %431 = vst.msk [vmem:[#allocation2 + $0xa8] sm:$0xff] %vm408_vm0, %v3814_v0 }
  0x7a   : > { %432 = vst.msk [vmem:[#allocation2 + $0xb0] sm:$0xff] %vm408_vm0, %v3814_v0 }
  0x7b   : > { %433 = vst.msk [vmem:[#allocation2 + $0xb8] sm:$0x3] %vm411_vm1, %v3814_v0 }
  0x7c   : > { %437 = vst.msk [vmem:[#allocation2 + $0xd8] sm:$0xff] %vm408_vm0, %v3814_v0 }
  0x7d   : > { %438 = vst.msk [vmem:[#allocation2 + $0xe0] sm:$0xff] %vm408_vm0, %v3814_v0 }
  0x7e   : > { %439 = vst.msk [vmem:[#allocation2 + $0xe8] sm:$0x3] %vm411_vm1, %v3814_v0 }
  0x7f   : > { %440 = vst.msk [vmem:[#allocation2 + $0xf0] sm:$0xff] %vm408_vm0, %v3814_v0 }
  0x80   : > { %441 = vst.msk [vmem:[#allocation2 + $0xf8] sm:$0xff] %vm408_vm0, %v3814_v0 }
  0x81   : > { %442 = vst.msk [vmem:[#allocation2 + $0x100] sm:$0x3] %vm411_vm1, %v3814_v0 }
  0x82   : > { %443 = vst.msk [vmem:[#allocation2 + $0x108] sm:$0xff] %vm408_vm0, %v3814_v0 }
  0x83   : > { %444 = vst.msk [vmem:[#allocation2 + $0x110] sm:$0xff] %vm408_vm0, %v3814_v0 }
  0x84   : > { %445 = vst.msk [vmem:[#allocation2 + $0x118] sm:$0x3] %vm411_vm1, %v3814_v0 }
  0x85   : > { %446 = vst.msk [vmem:[#allocation2 + $0x120] sm:$0xff] %vm408_vm0, %v3814_v0 }
  0x86   : > { %447 = vst.msk [vmem:[#allocation2 + $0x128] sm:$0xff] %vm408_vm0, %v3814_v0 }
  0x87   : > { %448 = vst.msk [vmem:[#allocation2 + $0x130] sm:$0x3] %vm411_vm1, %v3814_v0 }
  0x88   : > { %449 = vst.msk [vmem:[#allocation2 + $0x138] sm:$0xff] %vm408_vm0, %v3814_v0 }
  0x89   : > { %450 = vst.msk [vmem:[#allocation2 + $0x140] sm:$0xff] %vm408_vm0, %v3814_v0 }
  0x8a   : > { %451 = vst.msk [vmem:[#allocation2 + $0x148] sm:$0x3] %vm411_vm1, %v3814_v0 }
  0x8b   : > { %452 = vst.msk [vmem:[#allocation2 + $0x150] sm:$0xff] %vm408_vm0, %v3814_v0 }
  0x8c   : > { %453 = vst.msk [vmem:[#allocation2 + $0x158] sm:$0xff] %vm408_vm0, %v3814_v0 }
  0x8d   : > { %454 = vst.msk [vmem:[#allocation2 + $0x160] sm:$0x3] %vm411_vm1, %v3814_v0 }
  0x8e   : > { %455 = vst.msk [vmem:[#allocation2 + $0x168] sm:$0xff] %vm408_vm0, %v3814_v0 }
  0x8f   : > { %456 = vst.msk [vmem:[#allocation2 + $0x170] sm:$0xff] %vm408_vm0, %v3814_v0 }
  0x90   : > { %457 = vst.msk [vmem:[#allocation2 + $0x178] sm:$0x3] %vm411_vm1, %v3814_v0 }
  0x91   : > { %458 = vst.msk [vmem:[#allocation2 + $0x180] sm:$0xff] %vm408_vm0, %v3814_v0 }
  0x92   : > { %459 = vst.msk [vmem:[#allocation2 + $0x188] sm:$0xff] %vm408_vm0, %v3814_v0 }
  0x93   : > { %460 = vst.msk [vmem:[#allocation2 + $0x190] sm:$0x3] %vm411_vm1, %v3814_v0 }
  0x94   : > { %461 = vst.msk [vmem:[#allocation2 + $0x198] sm:$0xff] %vm408_vm0, %v3814_v0 }
  0x95   : > { %462 = vst.msk [vmem:[#allocation2 + $0x1a0] sm:$0xff] %vm408_vm0, %v3814_v0 }
  0x96   : > { %463 = vst.msk [vmem:[#allocation2 + $0x1a8] sm:$0x3] %vm411_vm1, %v3814_v0  ;;  %v3330_v0 = vld [vmem:[%s4064_s11 + $0x40] sm:$0xff] }
  0x97   : > { %513 = vst.msk [vmem:[#allocation2 + $0xd9] sm:$0xff] %vm408_vm0, %v480_v22  ;;  %1520 = vmatpush.bf16.msrb.mxu0 %v3330_v0  ;;  %v475_v22 = vld [vmem:[%s4053_s5 + $0x58] sm:$0xff] }
  0x98   : > { %514 = vst.msk [vmem:[#allocation2 + $0xe1] sm:$0xff] %vm408_vm0, %v481_v23 }
  0x99   : > { %497 = vst.msk [vmem:[#allocation2 + $0x19] sm:$0xff] %vm408_vm0, %v464_v24 }
  0x9a   : > { %498 = vst.msk [vmem:[#allocation2 + $0x21] sm:$0xff] %vm408_vm0, %v465_v25 }
  0x9b   : > { %515 = vst.msk [vmem:[#allocation2 + $0xf1] sm:$0xff] %vm408_vm0, %v482_v26 }
  0x9c   : > { %516 = vst.msk [vmem:[#allocation2 + $0xf9] sm:$0xff] %vm408_vm0, %v483_v27 }
  0x9d   : > { %499 = vst.msk [vmem:[#allocation2 + $0x31] sm:$0xff] %vm408_vm0, %v466_v28 }
  0x9e   : > { %v599_v32 = vld [vmem:[#allocation2 + $0xd9] sm:$0xff]  ;;  %500 = vst.msk [vmem:[#allocation2 + $0x39] sm:$0xff] %vm408_vm0, %v467_v29 }
  0x9f   : > { %v547_v33 = vld [vmem:[#allocation2 + $0xd8] sm:$0xff]  ;;  %v600_v35 = vld [vmem:[#allocation2 + $0xe1] sm:$0xff]  ;;  %517 = vst.msk [vmem:[#allocation2 + $0x109] sm:$0xff] %vm408_vm0, %v484_v30 }
  0xa0   : > { %v548_v36 = vld [vmem:[#allocation2 + $0xe0] sm:$0xff]  ;;  %v4228_v38 = vpack.c.bf16 %v600_v35, %v599_v32  ;;  %v531_v41 = vld [vmem:[#allocation2 + $0x18] sm:$0xff]  ;;  %518 = vst.msk [vmem:[#allocation2 + $0x111] sm:$0xff] %vm408_vm0, %v485_v31  ;;  %v492_v35 = vld [vmem:[%s4053_s5 + $0xe0] sm:$0xff] }
  0xa1   : > { %v4230_v39 = vpack.c.bf16 %v548_v36, %v547_v33  ;;  %v583_v40 = vld [vmem:[#allocation2 + $0x19] sm:$0xff]  ;;  %v584_v42 = vld [vmem:[#allocation2 + $0x21] sm:$0xff]  ;;  %501 = vst.msk [vmem:[#allocation2 + $0x49] sm:$0xff] %vm408_vm0, %v468_v34 }
  0xa2   : > { %v532_v43 = vld [vmem:[#allocation2 + $0x20] sm:$0xff]  ;;  %3063 = vmatmul.msk.bf16.gmra.mxu2 %vm408_vm0, %v4228_v38  ;;  %v4238_v44 = vpack.c.bf16 %v584_v42, %v583_v40  ;;  %502 = vst.msk [vmem:[#allocation2 + $0x51] sm:$0xff] %vm408_vm0, %v469_v37  ;;  %v601_v49 = vld [vmem:[#allocation2 + $0xf1] sm:$0xff] }
  0xa3   : > { %3087 = vmatmul.msk.bf16.gmra.mxu3 %vm408_vm0, %v4230_v39  ;;  %v4240_v45 = vpack.c.bf16 %v532_v43, %v531_v41  ;;  %519 = vst.msk [vmem:[#allocation2 + $0x121] sm:$0xff] %vm408_vm0, %v486_v46  ;;  %v602_v51 = vld [vmem:[#allocation2 + $0xf9] sm:$0xff]  ;;  %v549_v52 = vld [vmem:[#allocation2 + $0xf0] sm:$0xff] }
  0xa4   : > { %3055 = vmatmul.msk.bf16.gmra.mxu0 %vm408_vm0, %v4238_v44  ;;  %520 = vst.msk [vmem:[#allocation2 + $0x129] sm:$0xff] %vm408_vm0, %v487_v47  ;;  %v550_v53 = vld [vmem:[#allocation2 + $0xf8] sm:$0xff]  ;;  %v533_v56 = vld [vmem:[#allocation2 + $0x30] sm:$0xff]  ;;  %v4255_v58 = vpack.c.bf16 %v602_v51, %v601_v49 }
  0xa5   : > { %3079 = vmatmul.msk.bf16.gmra.mxu1 %vm408_vm0, %v4240_v45  ;;  %503 = vst.msk [vmem:[#allocation2 + $0x61] sm:$0xff] %vm408_vm0, %v470_v48  ;;  %v585_v54 = vld [vmem:[#allocation2 + $0x31] sm:$0xff]  ;;  %v586_v55 = vld [vmem:[#allocation2 + $0x39] sm:$0xff]  ;;  %v4257_v59 = vpack.c.bf16 %v550_v53, %v549_v52 }
  0xa6   : > { %504 = vst.msk [vmem:[#allocation2 + $0x69] sm:$0xff] %vm408_vm0, %v471_v50  ;;  %v534_v57 = vld [vmem:[#allocation2 + $0x38] sm:$0xff]  ;;  %v4259_v60 = vpack.c.bf16 %v586_v55, %v585_v54  ;;  %v603_v5 = vld [vmem:[#allocation2 + $0x109] sm:$0xff] }
  0xa7   : > { %v4261_v61 = vpack.c.bf16 %v534_v57, %v533_v56  ;;  %521 = vst.msk [vmem:[#allocation2 + $0x139] sm:$0xff] %vm408_vm0, %v488_v1  ;;  %v604_v6 = vld [vmem:[#allocation2 + $0x111] sm:$0xff]  ;;  %v551_v7 = vld [vmem:[#allocation2 + $0x108] sm:$0xff] }
  0xa8   : > { %522 = vst.msk [vmem:[#allocation2 + $0x141] sm:$0xff] %vm408_vm0, %v489_v2  ;;  %v552_v8 = vld [vmem:[#allocation2 + $0x110] sm:$0xff]  ;;  %v535_v11 = vld [vmem:[#allocation2 + $0x48] sm:$0xff]  ;;  %v4282_v13 = vpack.c.bf16 %v604_v6, %v603_v5  ;;  %v493_v36 = vld [vmem:[%s4053_s5 + $0xe8] sm:$0xff] }
  0xa9   : > { %505 = vst.msk [vmem:[#allocation2 + $0x79] sm:$0xff] %vm408_vm0, %v472_v3  ;;  %v587_v9 = vld [vmem:[#allocation2 + $0x49] sm:$0xff]  ;;  %v588_v10 = vld [vmem:[#allocation2 + $0x51] sm:$0xff]  ;;  %v4284_v14 = vpack.c.bf16 %v552_v8, %v551_v7 }
  0xaa   : > { %506 = vst.msk [vmem:[#allocation2 + $0x81] sm:$0xff] %vm408_vm0, %v473_v4  ;;  %v536_v12 = vld [vmem:[#allocation2 + $0x50] sm:$0xff]  ;;  %v4286_v15 = vpack.c.bf16 %v588_v10, %v587_v9  ;;  %v605_v23 = vld [vmem:[#allocation2 + $0x121] sm:$0xff]  ;;  %v477_v40 = vld [vmem:[%s4053_s5 + $0x68] sm:$0xff] }
  0xab   : > { %v4288_v16 = vpack.c.bf16 %v536_v12, %v535_v11  ;;  %523 = vst.msk [vmem:[#allocation2 + $0x151] sm:$0xff] %vm408_vm0, %v490_v19  ;;  %v606_v24 = vld [vmem:[#allocation2 + $0x129] sm:$0xff]  ;;  %v553_v25 = vld [vmem:[#allocation2 + $0x120] sm:$0xff] }
  0xac   : > { %524 = vst.msk [vmem:[#allocation2 + $0x159] sm:$0xff] %vm408_vm0, %v491_v20  ;;  %v554_v26 = vld [vmem:[#allocation2 + $0x128] sm:$0xff]  ;;  %v537_v29 = vld [vmem:[#allocation2 + $0x60] sm:$0xff]  ;;  %v4306_v31 = vpack.c.bf16 %v606_v24, %v605_v23  ;;  %v476_v37 = vld [vmem:[%s4053_s5 + $0x60] sm:$0xff] }
  0xad   : > { %507 = vst.msk [vmem:[#allocation2 + $0x91] sm:$0xff] %vm408_vm0, %v474_v21  ;;  %v589_v27 = vld [vmem:[#allocation2 + $0x61] sm:$0xff]  ;;  %v590_v28 = vld [vmem:[#allocation2 + $0x69] sm:$0xff]  ;;  %v4308_v32 = vpack.c.bf16 %v554_v26, %v553_v25 }
  0xae   : > { %508 = vst.msk [vmem:[#allocation2 + $0x99] sm:$0xff] %vm408_vm0, %v475_v22  ;;  %v538_v30 = vld [vmem:[#allocation2 + $0x68] sm:$0xff]  ;;  %v4310_v33 = vpack.c.bf16 %v590_v28, %v589_v27  ;;  %v607_v41 = vld [vmem:[#allocation2 + $0x139] sm:$0xff] }
  0xaf   : > { %v4312_v34 = vpack.c.bf16 %v538_v30, %v537_v29  ;;  %525 = vst.msk [vmem:[#allocation2 + $0x169] sm:$0xff] %vm408_vm0, %v492_v35  ;;  %v608_v42 = vld [vmem:[#allocation2 + $0x141] sm:$0xff]  ;;  %v555_v43 = vld [vmem:[#allocation2 + $0x138] sm:$0xff] }
  0xb0   : > { %526 = vst.msk [vmem:[#allocation2 + $0x171] sm:$0xff] %vm408_vm0, %v493_v36  ;;  %v556_v46 = vld [vmem:[#allocation2 + $0x140] sm:$0xff]  ;;  %v539_v49 = vld [vmem:[#allocation2 + $0x78] sm:$0xff]  ;;  %v4330_v51 = vpack.c.bf16 %v608_v42, %v607_v41 }
  0xb1   : > { %509 = vst.msk [vmem:[#allocation2 + $0xa9] sm:$0xff] %vm408_vm0, %v476_v37  ;;  %v591_v47 = vld [vmem:[#allocation2 + $0x79] sm:$0xff]  ;;  %v592_v48 = vld [vmem:[#allocation2 + $0x81] sm:$0xff]  ;;  %v4332_v52 = vpack.c.bf16 %v556_v46, %v555_v43  ;;  %v933_v43 = vld [vmem:[#allocation2 + $0xa] sm:$0xff] }
  0xb2   : > { %3064 = vmatmul.msk.bf16.gmra.mxu2 %vm408_vm0, %v4255_v58  ;;  %510 = vst.msk [vmem:[#allocation2 + $0xb1] sm:$0xff] %vm408_vm0, %v477_v40  ;;  %v540_v50 = vld [vmem:[#allocation2 + $0x80] sm:$0xff]  ;;  %v4334_v53 = vpack.c.bf16 %v592_v48, %v591_v47  ;;  %v609_v55 = vld [vmem:[#allocation2 + $0x151] sm:$0xff] }
  0xb3   : > { %3088 = vmatmul.msk.bf16.gmra.mxu3 %vm408_vm0, %v4257_v59  ;;  %v4336_v54 = vpack.c.bf16 %v540_v50, %v539_v49  ;;  %v610_v56 = vld [vmem:[#allocation2 + $0x159] sm:$0xff]  ;;  %v557_v57 = vld [vmem:[#allocation2 + $0x150] sm:$0xff]  ;;  %v932_v42 = vld [vmem:[#allocation2 + $0x2] sm:$0xff] }
  0xb4   : > { %3056 = vmatmul.msk.bf16.gmra.mxu0 %vm408_vm0, %v4259_v60  ;;  %v558_v62 = vld [vmem:[#allocation2 + $0x158] sm:$0xff]  ;;  %v541_v3 = vld [vmem:[#allocation2 + $0x90] sm:$0xff]  ;;  %v4348_v6 = vpack.c.bf16 %v610_v56, %v609_v55  ;;  %v1635_v47 = vld [vmem:[#allocation2 + $0x22] sm:$0xff]  ;;  %v964_v48 = vpack.c.bf16 %v933_v43, %v932_v42 }
  0xb5   : > { %3080 = vmatmul.msk.bf16.gmra.mxu1 %vm408_vm0, %v4261_v61  ;;  %v593_v63 = vld [vmem:[#allocation2 + $0x91] sm:$0xff]  ;;  %v594_v2 = vld [vmem:[#allocation2 + $0x99] sm:$0xff]  ;;  %v4350_v7 = vpack.c.bf16 %v558_v62, %v557_v57 }
  0xb6   : > { %v542_v4 = vld [vmem:[#allocation2 + $0x98] sm:$0xff]  ;;  %v4352_v8 = vpack.c.bf16 %v594_v2, %v593_v63  ;;  %v3332_v23 = vld [vmem:[%s4064_s11 + $0x50] sm:$0xff]  ;;  %v559_v26 = vld [vmem:[#allocation2 + $0x168] sm:$0xff] }
  0xb7   : > { %v4354_v9 = vpack.c.bf16 %v542_v4, %v541_v3  ;;  %v3335_v10 = vld [vmem:[%s4064_s11 + $0x68] sm:$0xff]  ;;  %v3337_v11 = vld [vmem:[%s4064_s11 + $0x78] sm:$0xff]  ;;  %v560_v27 = vld [vmem:[#allocation2 + $0x170] sm:$0xff] }
  0xb8   : > { %v3333_v12 = vld [vmem:[%s4064_s11 + $0x58] sm:$0xff]  ;;  %1988 = vmatpush.bf16.msra.mxu2 %v3335_v10  ;;  %v3339_v21 = vld [vmem:[%s4064_s11 + $0x88] sm:$0xff]  ;;  %2222 = vmatpush.bf16.msra.mxu3 %v3337_v11  ;;  %v4373_v37 = vpack.c.bf16 %v560_v27, %v559_v26 }
  0xb9   : > { %1753 = vmatpush.bf16.msrb.mxu1 %v3333_v12  ;;  %2456 = vmatpush.bf16.msra.mxu0 %v3339_v21  ;;  %v611_v24 = vld [vmem:[#allocation2 + $0x169] sm:$0xff]  ;;  %v612_v25 = vld [vmem:[#allocation2 + $0x171] sm:$0xff]  ;;  %v1634_v46 = vld [vmem:[#allocation2 + $0x1a] sm:$0xff] }
  0xba   : > { %v595_v28 = vld [vmem:[#allocation2 + $0xa9] sm:$0xff]  ;;  %v596_v29 = vld [vmem:[#allocation2 + $0xb1] sm:$0xff]  ;;  %v4371_v36 = vpack.c.bf16 %v612_v25, %v611_v24  ;;  %v1666_v49 = vpack.c.bf16 %v1635_v47, %v1634_v46  ;;  %v1637_v63 = vld [vmem:[#allocation2 + $0x3a] sm:$0xff] }
  0xbb   : > { %v543_v30 = vld [vmem:[#allocation2 + $0xa8] sm:$0xff]  ;;  %v544_v35 = vld [vmem:[#allocation2 + $0xb0] sm:$0xff]  ;;  %v4375_v40 = vpack.c.bf16 %v596_v29, %v595_v28 }
  0xbc   : > { %v4377_v41 = vpack.c.bf16 %v544_v35, %v543_v30  ;;  %v1636_v62 = vld [vmem:[#allocation2 + $0x32] sm:$0xff]  ;;  %v1638_v21 = vld [vmem:[#allocation2 + $0x4a] sm:$0xff]  ;;  %v1640_v47 = vld [vmem:[#allocation2 + $0x62] sm:$0xff] }
  0xbd   : > { %1754 = vmatpush.bf16.msrb.mxu1 %v3332_v23  ;;  %v1639_v23 = vld [vmem:[#allocation2 + $0x52] sm:$0xff] }
  0xc2   : > { %3065 = vmatmul.msk.bf16.gmra.mxu2 %vm408_vm0, %v4282_v13 }
  0xc3   : > { %3089 = vmatmul.msk.bf16.gmra.mxu3 %vm408_vm0, %v4284_v14 }
  0xc4   : > { %3057 = vmatmul.msk.bf16.gmra.mxu0 %vm408_vm0, %v4286_v15 }
  0xc5   : > { %3081 = vmatmul.msk.bf16.gmra.mxu1 %vm408_vm0, %v4288_v16 }
  0xd2   : > { %3066 = vmatmul.msk.bf16.gmra.mxu2 %vm408_vm0, %v4306_v31 }
  0xd3   : > { %3090 = vmatmul.msk.bf16.gmra.mxu3 %vm408_vm0, %v4308_v32 }
  0xd4   : > { %3058 = vmatmul.msk.bf16.gmra.mxu0 %vm408_vm0, %v4310_v33 }
  0xd5   : > { %3082 = vmatmul.msk.bf16.gmra.mxu1 %vm408_vm0, %v4312_v34 }
  0xe2   : > { %3067 = vmatmul.msk.bf16.gmra.mxu2 %vm408_vm0, %v4330_v51 }
  0xe3   : > { %3091 = vmatmul.msk.bf16.gmra.mxu3 %vm408_vm0, %v4332_v52 }
  0xe4   : > { %3059 = vmatmul.msk.bf16.gmra.mxu0 %vm408_vm0, %v4334_v53 }
  0xe5   : > { %3083 = vmatmul.msk.bf16.gmra.mxu1 %vm408_vm0, %v4336_v54 }
  0xeb   : > { %v852_v1 = vpop.f32.mrf.mxu1 }
  0xec   : > { %v703_v0 = vpop.f32.mrf.mxu0 }
  0xed   : > { %v4346_v5 = vadd.f32 %v852_v1, %v703_v0  ;;  %v4401_v0 = vpack.c.bf16 %v1637_v63, %v1636_v62 }
  0xf2   : > { %3068 = vmatmul.msk.bf16.gmra.mxu2 %vm408_vm0, %v4348_v6 }
  0xf3   : > { %3092 = vmatmul.msk.bf16.gmra.mxu3 %vm408_vm0, %v4350_v7  ;;  %v4395_v55 = vpop.f32.mrf.mxu1 }
  0xf4   : > { %3060 = vmatmul.msk.bf16.gmra.mxu0 %vm408_vm0, %v4352_v8  ;;  %v4393_v50 = vpop.f32.mrf.mxu0 }
  0xf5   : > { %3084 = vmatmul.msk.bf16.gmra.mxu1 %vm408_vm0, %v4354_v9  ;;  %v743_v19 = vpop.f32.mrf.mxu2 }
  0xf6   : > { %v892_v20 = vpop.f32.mrf.mxu3 }
  0xf7   : > { %v4368_v22 = vadd.f32 %v892_v20, %v743_v19 }
  0xfd   : > { %v4397_v56 = vpop.f32.mrf.mxu2 }
  0xfe   : > { %v4399_v57 = vpop.f32.mrf.mxu3 }
 0x102   : > { %3069 = vmatmul.msk.bf16.gmra.mxu2 %vm408_vm0, %v4371_v36 }
 0x103   : > { %3093 = vmatmul.msk.bf16.gmra.mxu3 %vm408_vm0, %v4373_v37 }
 0x104   : > { %3061 = vmatmul.msk.bf16.gmra.mxu0 %vm408_vm0, %v4375_v40 }
 0x105   : > { %3085 = vmatmul.msk.bf16.gmra.mxu1 %vm408_vm0, %v4377_v41 }
 0x112   : > { %3106 = vmatmul.msk.bf16.vlgmr.msrb.gmra.mxu2 %vm408_vm0, %v964_v48  ;;  %v1641_v48 = vld [vmem:[#allocation2 + $0x6a] sm:$0xff] }
 0x113   : > { %3134 = vmatmul.msk.bf16.vlgmr.msrb.gmra.mxu3 %vm408_vm0, %v4240_v45 }
 0x114   : > { %3162 = vmatmul.msk.bf16.vlgmr.msrb.gmra.mxu0 %vm408_vm0, %v4238_v44 }
 0x115   : > { %3190 = vmatmul.msk.bf16.vlgmr.msrb.gmra.mxu1 %vm408_vm0, %v1666_v49 }
 0x121   : > { %v708_v1 = vpop.f32.mrf.mxu0 }
 0x122   : > { %v857_v2 = vpop.f32.mrf.mxu1  ;;  %3107 = vmatmul.msk.bf16.gmra.mxu2 %vm408_vm0, %v1666_v49 }
 0x123   : > { %v4403_v45 = vadd.f32 %v857_v2, %v708_v1  ;;  %3135 = vmatmul.msk.bf16.gmra.mxu3 %vm408_vm0, %v4261_v61  ;;  %v4418_v61 = vpack.c.bf16 %v1639_v23, %v1638_v21  ;;  %v1642_v21 = vld [vmem:[#allocation2 + $0x7a] sm:$0xff]  ;;  %v1643_v23 = vld [vmem:[#allocation2 + $0x82] sm:$0xff] }
 0x124   : > { %3163 = vmatmul.msk.bf16.gmra.mxu0 %vm408_vm0, %v4259_v60 }
 0x125   : > { %3191 = vmatmul.msk.bf16.gmra.mxu1 %vm408_vm0, %v4401_v0  ;;  %v748_v44 = vpop.f32.mrf.mxu2 }
 0x126   : > { %v897_v3 = vpop.f32.mrf.mxu3 }
 0x127   : > { %v4412_v4 = vadd.f32 %v897_v3, %v748_v44 }
 0x129   : > { %v710_v10 = vpop.f32.mrf.mxu0 }
 0x12a   : > { %v859_v11 = vpop.f32.mrf.mxu1 }
 0x12b   : > { %v4414_v12 = vadd.f32 %v859_v11, %v710_v10 }
 0x12d   : > { %v750_v19 = vpop.f32.mrf.mxu2 }
 0x12e   : > { %v899_v20 = vpop.f32.mrf.mxu3 }
 0x12f   : > { %v4416_v24 = vadd.f32 %v899_v20, %v750_v19 }
 0x131   : > { %v713_v60 = vpop.f32.mrf.mxu0 }
 0x132   : > { %v862_v25 = vpop.f32.mrf.mxu1  ;;  %3108 = vmatmul.msk.bf16.gmra.mxu2 %vm408_vm0, %v4401_v0 }
 0x133   : > { %v4420_v26 = vadd.f32 %v862_v25, %v713_v60  ;;  %3136 = vmatmul.msk.bf16.gmra.mxu3 %vm408_vm0, %v4288_v16  ;;  %v4436_v16 = vpack.c.bf16 %v1641_v48, %v1640_v47 }
 0x134   : > { %3164 = vmatmul.msk.bf16.gmra.mxu0 %vm408_vm0, %v4286_v15 }
 0x135   : > { %3192 = vmatmul.msk.bf16.gmra.mxu1 %vm408_vm0, %v4418_v61  ;;  %v753_v27 = vpop.f32.mrf.mxu2 }
 0x136   : > { %v902_v28 = vpop.f32.mrf.mxu3 }
 0x137   : > { %v4430_v29 = vadd.f32 %v902_v28, %v753_v27 }
 0x139   : > { %v715_v30 = vpop.f32.mrf.mxu0 }
 0x13a   : > { %v864_v35 = vpop.f32.mrf.mxu1 }
 0x13b   : > { %v4432_v42 = vadd.f32 %v864_v35, %v715_v30 }
 0x13d   : > { %v755_v43 = vpop.f32.mrf.mxu2 }
 0x13e   : > { %v904_v46 = vpop.f32.mrf.mxu3 }
 0x13f   : > { %v4434_v49 = vadd.f32 %v904_v46, %v755_v43 }
 0x141   : > { %v718_v15 = vpop.f32.mrf.mxu0 }
 0x142   : > { %v867_v62 = vpop.f32.mrf.mxu1  ;;  %3109 = vmatmul.msk.bf16.gmra.mxu2 %vm408_vm0, %v4418_v61 }
 0x143   : > { %v4438_v63 = vadd.f32 %v867_v62, %v718_v15  ;;  %3137 = vmatmul.msk.bf16.gmra.mxu3 %vm408_vm0, %v4312_v34  ;;  %v4454_v34 = vpack.c.bf16 %v1643_v23, %v1642_v21  ;;  %v1644_v62 = vld [vmem:[#allocation2 + $0x92] sm:$0xff] }
 0x144   : > { %3165 = vmatmul.msk.bf16.gmra.mxu0 %vm408_vm0, %v4310_v33 }
 0x145   : > { %3193 = vmatmul.msk.bf16.gmra.mxu1 %vm408_vm0, %v4436_v16  ;;  %v758_v1 = vpop.f32.mrf.mxu2 }
 0x146   : > { %v907_v2 = vpop.f32.mrf.mxu3 }
 0x147   : > { %v4448_v44 = vadd.f32 %v907_v2, %v758_v1  ;;  %v1645_v1 = vld [vmem:[#allocation2 + $0x9a] sm:$0xff] }
 0x149   : > { %v720_v3 = vpop.f32.mrf.mxu0 }
 0x14a   : > { %v869_v10 = vpop.f32.mrf.mxu1 }
 0x14b   : > { %v4450_v11 = vadd.f32 %v869_v10, %v720_v3 }
 0x14d   : > { %v760_v19 = vpop.f32.mrf.mxu2 }
 0x14e   : > { %v909_v20 = vpop.f32.mrf.mxu3 }
 0x14f   : > { %v4452_v60 = vadd.f32 %v909_v20, %v760_v19 }
 0x151   : > { %v723_v33 = vpop.f32.mrf.mxu0 }
 0x152   : > { %v872_v25 = vpop.f32.mrf.mxu1  ;;  %3110 = vmatmul.msk.bf16.gmra.mxu2 %vm408_vm0, %v4436_v16 }
 0x153   : > { %v4456_v27 = vadd.f32 %v872_v25, %v723_v33  ;;  %3138 = vmatmul.msk.bf16.gmra.mxu3 %vm408_vm0, %v4336_v54  ;;  %v4472_v54 = vpack.c.bf16 %v1645_v1, %v1644_v62  ;;  %v3334_v1 = vld [vmem:[%s4064_s11 + $0x60] sm:$0xff] }
 0x154   : > { %3166 = vmatmul.msk.bf16.gmra.mxu0 %vm408_vm0, %v4334_v53  ;;  %1989 = vmatpush.bf16.msra.mxu2 %v3334_v1 }
 0x155   : > { %3194 = vmatmul.msk.bf16.gmra.mxu1 %vm408_vm0, %v4454_v34  ;;  %v763_v28 = vpop.f32.mrf.mxu2 }
 0x156   : > { %v912_v30 = vpop.f32.mrf.mxu3 }
 0x157   : > { %v4466_v35 = vadd.f32 %v912_v30, %v763_v28 }
 0x159   : > { %5100 = vst [vmem:[#allocation31_spill] sm:$0xff] %v4466_v35  ;;  %v725_v43 = vpop.f32.mrf.mxu0 }
 0x15a   : > { %v874_v46 = vpop.f32.mrf.mxu1 }
 0x15b   : > { %v4468_v47 = vadd.f32 %v874_v46, %v725_v43  ;;  %v1646_v43 = vld [vmem:[#allocation2 + $0xaa] sm:$0xff] }
 0x15d   : > { %v765_v48 = vpop.f32.mrf.mxu2 }
 0x15e   : > { %v914_v15 = vpop.f32.mrf.mxu3 }
 0x15f   : > { %v4470_v2 = vadd.f32 %v914_v15, %v765_v48 }
 0x161   : > { %5101 = vst [vmem:[#allocation32_spill] sm:$0xff] %v4470_v2  ;;  %v728_v53 = vpop.f32.mrf.mxu0 }
 0x162   : > { %v877_v3 = vpop.f32.mrf.mxu1  ;;  %3111 = vmatmul.msk.bf16.gmra.mxu2 %vm408_vm0, %v4454_v34 }
 0x163   : > { %v4474_v10 = vadd.f32 %v877_v3, %v728_v53  ;;  %3139 = vmatmul.msk.bf16.gmra.mxu3 %vm408_vm0, %v4354_v9  ;;  %v1647_v9 = vld [vmem:[#allocation2 + $0xb2] sm:$0xff] }
 0x164   : > { %3167 = vmatmul.msk.bf16.gmra.mxu0 %vm408_vm0, %v4352_v8  ;;  %v4490_v8 = vpack.c.bf16 %v1647_v9, %v1646_v43  ;;  %v3336_v53 = vld [vmem:[%s4064_s11 + $0x70] sm:$0xff] }
 0x165   : > { %3195 = vmatmul.msk.bf16.gmra.mxu1 %vm408_vm0, %v4472_v54  ;;  %v768_v19 = vpop.f32.mrf.mxu2  ;;  %2223 = vmatpush.bf16.msra.mxu3 %v3336_v53  ;;  %v1648_v9 = vld [vmem:[#allocation2 + $0xc2] sm:$0xff] }
 0x166   : > { %v917_v20 = vpop.f32.mrf.mxu3  ;;  %5104 = vst [vmem:[#allocation35_spill] sm:$0xff] %v4490_v8 }
 0x167   : > { %v4484_v21 = vadd.f32 %v917_v20, %v768_v19 }
 0x169   : > { %5102 = vst [vmem:[#allocation33_spill] sm:$0xff] %v4484_v21  ;;  %v730_v23 = vpop.f32.mrf.mxu0 }
 0x16a   : > { %v879_v33 = vpop.f32.mrf.mxu1 }
 0x16b   : > { %v4486_v25 = vadd.f32 %v879_v33, %v730_v23 }
 0x16d   : > { %v770_v28 = vpop.f32.mrf.mxu2 }
 0x16e   : > { %v919_v30 = vpop.f32.mrf.mxu3 }
 0x16f   : > { %v4488_v46 = vadd.f32 %v919_v30, %v770_v28  ;;  %v3338_v30 = vld [vmem:[%s4064_s11 + $0x80] sm:$0xff] }
 0x170   : > { %2457 = vmatpush.bf16.msra.mxu0 %v3338_v30 }
 0x171   : > { %5103 = vst [vmem:[#allocation34_spill] sm:$0xff] %v4488_v46  ;;  %v733_v48 = vpop.f32.mrf.mxu0 }
 0x172   : > { %v882_v15 = vpop.f32.mrf.mxu1  ;;  %3112 = vmatmul.msk.bf16.gmra.mxu2 %vm408_vm0, %v4472_v54 }
 0x173   : > { %v4492_v62 = vadd.f32 %v882_v15, %v733_v48  ;;  %3140 = vmatmul.msk.bf16.gmra.mxu3 %vm408_vm0, %v4377_v41  ;;  %v1649_v48 = vld [vmem:[#allocation2 + $0xca] sm:$0xff] }
 0x174   : > { %3168 = vmatmul.msk.bf16.gmra.mxu0 %vm408_vm0, %v4375_v40  ;;  %v4511_v15 = vpack.c.bf16 %v1649_v48, %v1648_v9  ;;  %v1650_v48 = vld [vmem:[#allocation2 + $0xda] sm:$0xff] }
 0x175   : > { %3196 = vmatmul.msk.bf16.gmra.mxu1 %vm408_vm0, %v4490_v8  ;;  %v773_v3 = vpop.f32.mrf.mxu2 }
 0x176   : > { %v922_v19 = vpop.f32.mrf.mxu3  ;;  %5107 = vst [vmem:[#allocation38_spill] sm:$0xff] %v4511_v15 }
 0x177   : > { %v4504_v20 = vadd.f32 %v922_v19, %v773_v3 }
 0x179   : > { %5105 = vst [vmem:[#allocation36_spill] sm:$0xff] %v4504_v20  ;;  %v735_v23 = vpop.f32.mrf.mxu0 }
 0x17a   : > { %v884_v33 = vpop.f32.mrf.mxu1 }
 0x17b   : > { %v4506_v28 = vadd.f32 %v884_v33, %v735_v23 }
 0x17d   : > { %v775_v41 = vpop.f32.mrf.mxu2 }
 0x17e   : > { %v924_v43 = vpop.f32.mrf.mxu3 }
 0x17f   : > { %v4509_v40 = vadd.f32 %v924_v43, %v775_v41 }
 0x181   : > { %5106 = vst [vmem:[#allocation37_spill] sm:$0xff] %v4509_v40  ;;  %v738_v46 = vpop.f32.mrf.mxu0 }
 0x182   : > { %v887_v1 = vpop.f32.mrf.mxu1  ;;  %3113 = vmatmul.msk.bf16.gmra.mxu2 %vm408_vm0, %v4490_v8 }
 0x183   : > { %v4513_v3 = vadd.f32 %v887_v1, %v738_v46  ;;  %3141 = vmatmul.msk.bf16.gmra.mxu3 %vm408_vm0, %v4122_v18  ;;  %v3341_v46 = vld [vmem:[%s4072_s16 + $0x8] sm:$0xff]  ;;  %v1651_v18 = vld [vmem:[#allocation2 + $0xe2] sm:$0xff] }
 0x184   : > { %3169 = vmatmul.msk.bf16.gmra.mxu0 %vm408_vm0, %v4118_v17  ;;  %2729 = vmatpush.bf16.msra.mxu1 %v3341_v46  ;;  %v4530_v17 = vpack.c.bf16 %v1651_v18, %v1650_v48  ;;  %v855_v48 = vadd.f32 %v4395_v55, %v4393_v50 }
 0x185   : > { %3197 = vmatmul.msk.bf16.gmra.mxu1 %vm408_vm0, %v4511_v15  ;;  %v778_v53 = vpop.f32.mrf.mxu2 }
 0x186   : > { %v927_v19 = vpop.f32.mrf.mxu3 }
 0x187   : > { %v4523_v23 = vadd.f32 %v927_v19, %v778_v53 }
 0x189   : > { %5108 = vst [vmem:[#allocation39_spill] sm:$0xff] %v4523_v23  ;;  %v740_v33 = vpop.f32.mrf.mxu0  ;;  %v1652_v23 = vld [vmem:[#allocation2 + $0xf2] sm:$0xff] }
 0x18a   : > { %v889_v30 = vpop.f32.mrf.mxu1 }
 0x18b   : > { %v4526_v41 = vadd.f32 %v889_v30, %v740_v33 }
 0x18d   : > { %v780_v43 = vpop.f32.mrf.mxu2 }
 0x18e   : > { %v929_v9 = vpop.f32.mrf.mxu3 }
 0x18f   : > { %v4528_v1 = vadd.f32 %v929_v9, %v780_v43 }
 0x191   : > { %5109 = vst [vmem:[#allocation40_spill] sm:$0xff] %v4528_v1  ;;  %v1522_v40 = vpop.f32.mrf.mxu0 }
 0x192   : > { %v1756_v20 = vpop.f32.mrf.mxu1  ;;  %3114 = vmatmul.msk.bf16.gmra.mxu2 %vm408_vm0, %v4511_v15 }
 0x193   : > { %3142 = vmatmul.msk.bf16.gmra.mxu3 %vm408_vm0, %v4230_v39 }
 0x194   : > { %3170 = vmatmul.msk.bf16.gmra.mxu0 %vm408_vm0, %v4228_v38  ;;  %v1653_v38 = vld [vmem:[#allocation2 + $0xfa] sm:$0xff] }
 0x195   : > { %3198 = vmatmul.msk.bf16.gmra.mxu1 %vm408_vm0, %v4530_v17  ;;  %v1054_v53 = vpop.f32.mrf.mxu2  ;;  %v4545_v8 = vpack.c.bf16 %v1653_v38, %v1652_v23 }
 0x196   : > { %v1288_v19 = vpop.f32.mrf.mxu3  ;;  %v1134_v33 = vadd.f32 %v1054_v53, %v4346_v5 }
 0x198   : > { %v1368_v30 = vadd.f32 %v1288_v19, %v1134_v33  ;;  %v1654_v33 = vld [vmem:[#allocation2 + $0x10a] sm:$0xff] }
 0x199   : > { %v1524_v46 = vpop.f32.mrf.mxu0 }
 0x19a   : > { %v1758_v43 = vpop.f32.mrf.mxu1  ;;  %v1602_v9 = vadd.f32 %v1522_v40, %v1368_v30  ;;  %v1655_v30 = vld [vmem:[#allocation2 + $0x112] sm:$0xff] }
 0x19c   : > { %v4543_v18 = vadd.f32 %v1756_v20, %v1602_v9 }
 0x19d   : > { %v1056_v39 = vpop.f32.mrf.mxu2 }
 0x19e   : > { %v1290_v1 = vpop.f32.mrf.mxu3  ;;  %v1135_v15 = vadd.f32 %v1056_v39, %v855_v48 }
 0x1a0   : > { %v1369_v21 = vadd.f32 %v1290_v1, %v1135_v15 }
 0x1a1   : > { %v1527_v2 = vpop.f32.mrf.mxu0 }
 0x1a2   : > { %v1761_v35 = vpop.f32.mrf.mxu1  ;;  %3115 = vmatmul.msk.bf16.gmra.mxu2 %vm408_vm0, %v4530_v17  ;;  %v1603_v5 = vadd.f32 %v1524_v46, %v1369_v21 }
 0x1a3   : > { %3143 = vmatmul.msk.bf16.gmra.mxu3 %vm408_vm0, %v4257_v59 }
 0x1a4   : > { %v4551_v50 = vadd.f32 %v1758_v43, %v1603_v5  ;;  %3171 = vmatmul.msk.bf16.gmra.mxu0 %vm408_vm0, %v4255_v58  ;;  %v4561_v43 = vpack.c.bf16 %v1655_v30, %v1654_v33 }
 0x1a5   : > { %3199 = vmatmul.msk.bf16.gmra.mxu1 %vm408_vm0, %v4545_v8  ;;  %v1059_v55 = vpop.f32.mrf.mxu2 }
 0x1a6   : > { %v1293_v20 = vpop.f32.mrf.mxu3  ;;  %v1136_v40 = vadd.f32 %v1059_v55, %v4403_v45 }
 0x1a8   : > { %v1370_v15 = vadd.f32 %v1293_v20, %v1136_v40 }
 0x1a9   : > { %v1529_v23 = vpop.f32.mrf.mxu0 }
 0x1aa   : > { %v1763_v1 = vpop.f32.mrf.mxu1  ;;  %v1604_v53 = vadd.f32 %v1527_v2, %v1370_v15 }
 0x1ac   : > { %v4558_v19 = vadd.f32 %v1761_v35, %v1604_v53 }
 0x1ad   : > { %v1061_v59 = vpop.f32.mrf.mxu2 }
 0x1ae   : > { %v1295_v21 = vpop.f32.mrf.mxu3  ;;  %v1137_v46 = vadd.f32 %v1061_v59, %v4414_v12 }
 0x1b0   : > { %v1371_v58 = vadd.f32 %v1295_v21, %v1137_v46 }
 0x1b1   : > { %v1532_v9 = vpop.f32.mrf.mxu0 }
 0x1b2   : > { %v1766_v48 = vpop.f32.mrf.mxu1  ;;  %3116 = vmatmul.msk.bf16.gmra.mxu2 %vm408_vm0, %v4545_v8  ;;  %v1605_v45 = vadd.f32 %v1529_v23, %v1371_v58  ;;  %v1656_v23 = vld [vmem:[#allocation2 + $0x122] sm:$0xff] }
 0x1b3   : > { %3144 = vmatmul.msk.bf16.gmra.mxu3 %vm408_vm0, %v4284_v14 }
 0x1b4   : > { %v4567_v35 = vadd.f32 %v1763_v1, %v1605_v45  ;;  %3172 = vmatmul.msk.bf16.gmra.mxu0 %vm408_vm0, %v4282_v13  ;;  %v1657_v1 = vld [vmem:[#allocation2 + $0x12a] sm:$0xff] }
 0x1b5   : > { %3200 = vmatmul.msk.bf16.gmra.mxu1 %vm408_vm0, %v4561_v43  ;;  %v1064_v12 = vpop.f32.mrf.mxu2  ;;  %v4577_v59 = vpack.c.bf16 %v1657_v1, %v1656_v23 }
 0x1b6   : > { %v1298_v2 = vpop.f32.mrf.mxu3  ;;  %v1138_v39 = vadd.f32 %v1064_v12, %v4420_v26 }
 0x1b8   : > { %v1372_v38 = vadd.f32 %v1298_v2, %v1138_v39 }
 0x1b9   : > { %v1534_v5 = vpop.f32.mrf.mxu0 }
 0x1ba   : > { %v1768_v55 = vpop.f32.mrf.mxu1  ;;  %v1606_v20 = vadd.f32 %v1532_v9, %v1372_v38  ;;  %v1658_v38 = vld [vmem:[#allocation2 + $0x13a] sm:$0xff] }
 0x1bc   : > { %v4574_v40 = vadd.f32 %v1766_v48, %v1606_v20 }
 0x1bd   : > { %v1066_v14 = vpop.f32.mrf.mxu2 }
 0x1be   : > { %v1300_v15 = vpop.f32.mrf.mxu3  ;;  %v1139_v53 = vadd.f32 %v1066_v14, %v4432_v42 }
 0x1c0   : > { %v1373_v13 = vadd.f32 %v1300_v15, %v1139_v53 }
 0x1c1   : > { %v1537_v21 = vpop.f32.mrf.mxu0 }
 0x1c2   : > { %v1771_v33 = vpop.f32.mrf.mxu1  ;;  %3117 = vmatmul.msk.bf16.gmra.mxu2 %vm408_vm0, %v4561_v43  ;;  %v1607_v26 = vadd.f32 %v1534_v5, %v1373_v13  ;;  %v1659_v5 = vld [vmem:[#allocation2 + $0x142] sm:$0xff] }
 0x1c3   : > { %3145 = vmatmul.msk.bf16.gmra.mxu3 %vm408_vm0, %v4308_v32  ;;  %v4593_v20 = vpack.c.bf16 %v1659_v5, %v1658_v38  ;;  %v494_v13 = vld [vmem:[%s4053_s5 + $0xf0] sm:$0xff] }
 0x1c4   : > { %v4583_v30 = vadd.f32 %v1768_v55, %v1607_v26  ;;  %3173 = vmatmul.msk.bf16.gmra.mxu0 %vm408_vm0, %v4306_v31  ;;  %527 = vst.msk [vmem:[#allocation2 + $0x181] sm:$0xff] %vm408_vm0, %v494_v13  ;;  %v1663_v13 = vld [vmem:[#allocation2 + $0x172] sm:$0xff] }
 0x1c5   : > { %3201 = vmatmul.msk.bf16.gmra.mxu1 %vm408_vm0, %v4577_v59  ;;  %v1069_v42 = vpop.f32.mrf.mxu2 }
 0x1c6   : > { %v1303_v46 = vpop.f32.mrf.mxu3  ;;  %v1140_v58 = vadd.f32 %v1069_v42, %v4438_v63 }
 0x1c8   : > { %v1374_v9 = vadd.f32 %v1303_v46, %v1140_v58 }
 0x1c9   : > { %v1539_v48 = vpop.f32.mrf.mxu0 }
 0x1ca   : > { %v1773_v45 = vpop.f32.mrf.mxu1  ;;  %v1608_v12 = vadd.f32 %v1537_v21, %v1374_v9  ;;  %v495_v21 = vld [vmem:[%s4053_s5 + $0xf8] sm:$0xff]  ;;  %v1660_v9 = vld [vmem:[#allocation2 + $0x152] sm:$0xff]  ;;  %s2858_s5 = scalar_lea.hbm %s5138_s15, %s3317_s30 }
 0x1cb   : > { %528 = vst.msk [vmem:[#allocation2 + $0x189] sm:$0xff] %vm408_vm0, %v495_v21  ;;  %s2861_s4 = sshll.u32 %s2858_s5, 4  ;;  %s2862_s4 = int_to_ptr.hbm [resolvable:$true] %s2861_s4 }
 0x1cc   : > { %v4590_v2 = vadd.f32 %v1771_v33, %v1608_v12  ;;  %s3668_s9 = sshra.s32 %s2862_s4, 4  ;;  %s3669_s9 = int_to_ptr.hbm [resolvable:$true] %s3668_s9 }
 0x1cd   : > { %v1071_v32 = vpop.f32.mrf.mxu2  ;;  %s3670_s11 = scalar_lea.hbm %s3669_s9, 256  ;;  %p3675_p4 = scmp.lt.s32.totalorder %s3669_s9, %s5138_s15 }
 0x1ce   : > { %v1305_v39 = vpop.f32.mrf.mxu3  ;;  %v1141_v31 = vadd.f32 %v1071_v32, %v4450_v11  ;;  %p3671_p5 = scmp.ne.s32.totalorder %s3669_s9, %s3670_s11  ;;  %p3676_p0 = scmp.lt.s32.totalorder %s3674_s1, %s3670_s11 }
 0x1d0   : > { %v1375_v55 = vadd.f32 %v1305_v39, %v1141_v31  ;;  %p3672_p8 = pnand %p3671_p5, %p4017_p3  ;;  %p3677_p9 = por %p3676_p0, %p3675_p4 }
 0x1d1   : > { %v1542_v14 = vpop.f32.mrf.mxu0 }
 0x1d2   : > { %v1776_v15 = vpop.f32.mrf.mxu1  ;;  %3118 = vmatmul.msk.bf16.gmra.mxu2 %vm408_vm0, %v4577_v59  ;;  %v1609_v63 = vadd.f32 %v1539_v48, %v1375_v55  ;;  %v1661_v48 = vld [vmem:[#allocation2 + $0x15a] sm:$0xff]  ;;  %p3673_p12 = pneg %p3672_p8 }
 0x1d3   : > { %3146 = vmatmul.msk.bf16.gmra.mxu3 %vm408_vm0, %v4332_v52  ;;  %v4615_v12 = vpack.c.bf16 %v1661_v48, %v1660_v9 }
 0x1d4   : > { %v4599_v23 = vadd.f32 %v1773_v45, %v1609_v63  ;;  %3174 = vmatmul.msk.bf16.gmra.mxu0 %vm408_vm0, %v4330_v51  ;;  %p3678_p10 = pnand %p3677_p9, %p3673_p12 }
 0x1d5   : > { %3202 = vmatmul.msk.bf16.gmra.mxu1 %vm408_vm0, %v4593_v20  ;;  %v1074_v11 = vpop.f32.mrf.mxu2 }
 0x1d6   : > { %v1308_v1 = vpop.f32.mrf.mxu3  ;;  %v1142_v53 = vadd.f32 %v1074_v11, %v4456_v27 }
 0x1d8   : > { %v1376_v33 = vadd.f32 %v1308_v1, %v1142_v53  ;;  %v1662_v53 = vld [vmem:[#allocation2 + $0x16a] sm:$0xff] }
 0x1d9   : > { %v1544_v26 = vpop.f32.mrf.mxu0 }
 0x1da   : > { %v4609_v52 = vpop.f32.mrf.mxu1  ;;  %v1610_v42 = vadd.f32 %v1542_v14, %v1376_v33  ;;  %v4633_v33 = vpack.c.bf16 %v1663_v13, %v1662_v53 }
 0x1dc   : > { %v4612_v46 = vadd.f32 %v1776_v15, %v1610_v42 }
 0x1dd   : > { %v1076_v51 = vpop.f32.mrf.mxu2 }
 0x1de   : > { %v1310_v58 = vpop.f32.mrf.mxu3  ;;  %v1143_v45 = vadd.f32 %v1076_v51, %v4468_v47 }
 0x1e0   : > { %v1377_v27 = vadd.f32 %v1310_v58, %v1143_v45 }
 0x1e1   : > { %v1547_v32 = vpop.f32.mrf.mxu0 }
 0x1e2   : > { %v1781_v39 = vpop.f32.mrf.mxu1  ;;  %3119 = vmatmul.msk.bf16.gmra.mxu2 %vm408_vm0, %v4593_v20  ;;  %v4621_v38 = vadd.f32 %v1544_v26, %v1377_v27 }
 0x1e3   : > { %3147 = vmatmul.msk.bf16.gmra.mxu3 %vm408_vm0, %v4350_v7 }
 0x1e4   : > { %3175 = vmatmul.msk.bf16.gmra.mxu0 %vm408_vm0, %v4348_v6 }
 0x1e5   : > { %3203 = vmatmul.msk.bf16.gmra.mxu1 %vm408_vm0, %v4615_v12  ;;  %v1079_v47 = vpop.f32.mrf.mxu2 }
 0x1e6   : > { %v1313_v5 = vpop.f32.mrf.mxu3  ;;  %v1144_v31 = vadd.f32 %v1079_v47, %v4474_v10  ;;  %v1430_v47 = vld [vmem:[#allocation2 + $0x181] sm:$0xff] }
 0x1e8   : > { %v1378_v55 = vadd.f32 %v1313_v5, %v1144_v31 }
 0x1e9   : > { %v1549_v14 = vpop.f32.mrf.mxu0 }
 0x1ea   : > { %v4628_v15 = vpop.f32.mrf.mxu1  ;;  %v1612_v63 = vadd.f32 %v1547_v32, %v1378_v55  ;;  %v1196_v32 = vld [vmem:[#allocation2 + $0x180] sm:$0xff] }
 0x1eb   : > { %v1664_v55 = vld [vmem:[#allocation2 + $0x182] sm:$0xff] }
 0x1ec   : > { %v4630_v11 = vadd.f32 %v1781_v39, %v1612_v63  ;;  %v1197_v39 = vld [vmem:[#allocation2 + $0x188] sm:$0xff] }
 0x1ed   : > { %v1081_v7 = vpop.f32.mrf.mxu2 }
 0x1ee   : > { %v1315_v1 = vpop.f32.mrf.mxu3  ;;  %v1145_v6 = vadd.f32 %v1081_v7, %v4486_v25  ;;  %v4651_v7 = vpack.c.bf16 %v1197_v39, %v1196_v32  ;;  %v1869_v32 = vld [vmem:[#allocation2 + $0x30] sm:$0xff]  ;;  %v1870_v39 = vld [vmem:[#allocation2 + $0x38] sm:$0xff] }
 0x1f0   : > { %v1379_v21 = vadd.f32 %v1315_v1, %v1145_v6 }
 0x1f1   : > { %v1552_v26 = vpop.f32.mrf.mxu0 }
 0x1f2   : > { %v1786_v42 = vpop.f32.mrf.mxu1  ;;  %3120 = vmatmul.msk.bf16.gmra.mxu2 %vm408_vm0, %v4615_v12  ;;  %v4639_v10 = vadd.f32 %v1549_v14, %v1379_v21  ;;  %v1665_v14 = vld [vmem:[#allocation2 + $0x18a] sm:$0xff] }
 0x1f3   : > { %3148 = vmatmul.msk.bf16.gmra.mxu3 %vm408_vm0, %v4373_v37  ;;  %v4655_v53 = vpack.c.bf16 %v1665_v14, %v1664_v55  ;;  %v1901_v14 = vpack.c.bf16 %v1870_v39, %v1869_v32  ;;  %v1871_v32 = vld [vmem:[#allocation2 + $0x48] sm:$0xff]  ;;  %v1872_v39 = vld [vmem:[#allocation2 + $0x50] sm:$0xff] }
 0x1f4   : > { %3176 = vmatmul.msk.bf16.gmra.mxu0 %vm408_vm0, %v4371_v36  ;;  %v1431_v36 = vld [vmem:[#allocation2 + $0x189] sm:$0xff] }
 0x1f5   : > { %3204 = vmatmul.msk.bf16.gmra.mxu1 %vm408_vm0, %v4633_v33  ;;  %v1084_v25 = vpop.f32.mrf.mxu2  ;;  %v4653_v1 = vpack.c.bf16 %v1431_v36, %v1430_v47  ;;  %v2104_v47 = vld [vmem:[#allocation2 + $0x39] sm:$0xff] }
 0x1f6   : > { %v1318_v51 = vpop.f32.mrf.mxu3  ;;  %v1146_v58 = vadd.f32 %v1084_v25, %v4492_v62 }
 0x1f8   : > { %v1380_v9 = vadd.f32 %v1318_v51, %v1146_v58 }
 0x1f9   : > { %v1554_v48 = vpop.f32.mrf.mxu0 }
 0x1fa   : > { %v4646_v45 = vpop.f32.mrf.mxu1  ;;  %v1614_v27 = vadd.f32 %v1552_v26, %v1380_v9  ;;  %v3340_v9 = vld [vmem:[%s4072_s16] sm:$0xff] }
 0x1fb   : > { %2730 = vmatpush.bf16.msra.mxu1 %v3340_v9 }
 0x1fc   : > { %v4648_v37 = vadd.f32 %v1786_v42, %v1614_v27 }
 0x1fd   : > { %v1086_v5 = vpop.f32.mrf.mxu2 }
 0x1fe   : > { %v1320_v31 = vpop.f32.mrf.mxu3  ;;  %v1147_v63 = vadd.f32 %v1086_v5, %v4506_v28 }
 0x200   : > { %v1381_v62 = vadd.f32 %v1320_v31, %v1147_v63 }
 0x201   : > { %v1557_v13 = vpop.f32.mrf.mxu0 }
 0x202   : > { %v1791_v6 = vpop.f32.mrf.mxu1  ;;  %3121 = vmatmul.msk.bf16.gmra.mxu2 %vm408_vm0, %v4633_v33  ;;  %v4661_v21 = vadd.f32 %v1554_v48, %v1381_v62  ;;  %v2103_v48 = vld [vmem:[#allocation2 + $0x31] sm:$0xff] }
 0x203   : > { %3149 = vmatmul.msk.bf16.gmra.mxu3 %vm408_vm0, %v4651_v7  ;;  %v2135_v63 = vpack.c.bf16 %v2104_v47, %v2103_v48  ;;  %v2105_v48 = vld [vmem:[#allocation2 + $0x49] sm:$0xff]  ;;  %v2106_v47 = vld [vmem:[#allocation2 + $0x51] sm:$0xff] }
 0x204   : > { %3177 = vmatmul.msk.bf16.gmra.mxu0 %vm408_vm0, %v4653_v1 }
 0x205   : > { %3205 = vmatmul.msk.bf16.gmra.mxu1 %vm408_vm0, %v4655_v53  ;;  %v1089_v28 = vpop.f32.mrf.mxu2 }
 0x206   : > { %v1323_v26 = vpop.f32.mrf.mxu3  ;;  %v1148_v42 = vadd.f32 %v1089_v28, %v4513_v3 }
 0x208   : > { %v1382_v25 = vadd.f32 %v1323_v26, %v1148_v42 }
 0x209   : > { %v1559_v51 = vpop.f32.mrf.mxu0 }
 0x20a   : > { %v4668_v58 = vpop.f32.mrf.mxu1  ;;  %v1616_v27 = vadd.f32 %v1557_v13, %v1382_v25 }
 0x20c   : > { %v4671_v5 = vadd.f32 %v1791_v6, %v1616_v27 }
 0x20d   : > { %v1091_v31 = vpop.f32.mrf.mxu2 }
 0x20e   : > { %v1325_v36 = vpop.f32.mrf.mxu3  ;;  %v1149_v55 = vadd.f32 %v1091_v31, %v4526_v41 }
 0x210   : > { %v1383_v3 = vadd.f32 %v1325_v36, %v1149_v55 }
 0x211   : > { %v1562_v62 = vpop.f32.mrf.mxu0 }
 0x212   : > { %v1796_v28 = vpop.f32.mrf.mxu1  ;;  %3218 = vmatmul.msk.bf16.vlgmr.msra.gmra.mxu2 %vm408_vm0, %v1901_v14  ;;  %v4676_v13 = vadd.f32 %v1559_v51, %v1383_v3  ;;  %v895_v51 = vadd.f32 %v4399_v57, %v4397_v56  ;;  %v1902_v14 = vpack.c.bf16 %v1872_v39, %v1871_v32  ;;  %v1873_v32 = vld [vmem:[#allocation2 + $0x60] sm:$0xff]  ;;  %v1874_v39 = vld [vmem:[#allocation2 + $0x68] sm:$0xff] }
 0x213   : > { %3246 = vmatmul.msk.bf16.vlgmr.msra.gmra.mxu3 %vm408_vm0, %v2135_v63  ;;  %v2136_v63 = vpack.c.bf16 %v2106_v47, %v2105_v48  ;;  %v2107_v48 = vld [vmem:[#allocation2 + $0x61] sm:$0xff]  ;;  %v2108_v47 = vld [vmem:[#allocation2 + $0x69] sm:$0xff] }
 0x214   : > { %3274 = vmatmul.msk.bf16.vlgmr.msra.gmra.mxu0 %vm408_vm0, %v4401_v0 }
 0x215   : > { %v1094_v6 = vpop.f32.mrf.mxu2 }
 0x216   : > { %v1328_v26 = vpop.f32.mrf.mxu3  ;;  %v1150_v42 = vadd.f32 %v1094_v6, %v4368_v22 }
 0x218   : > { %v1384_v25 = vadd.f32 %v1328_v26, %v1150_v42 }
 0x219   : > { %v1564_v41 = vpop.f32.mrf.mxu0 }
 0x21a   : > { %v4681_v9 = vpop.f32.mrf.mxu1  ;;  %v1618_v27 = vadd.f32 %v1562_v62, %v1384_v25 }
 0x21c   : > { %v4685_v31 = vadd.f32 %v1796_v28, %v1618_v27 }
 0x21d   : > { %v1096_v36 = vpop.f32.mrf.mxu2 }
 0x21e   : > { %v1330_v0 = vpop.f32.mrf.mxu3  ;;  %v1151_v55 = vadd.f32 %v1096_v36, %v895_v51 }
 0x220   : > { %v1385_v22 = vadd.f32 %v1330_v0, %v1151_v55  ;;  %v2137_v55 = vpack.c.bf16 %v2108_v47, %v2107_v48  ;;  %v2110_v48 = vld [vmem:[#allocation2 + $0x81] sm:$0xff] }
 0x221   : > { %v1567_v3 = vpop.f32.mrf.mxu0 }
 0x222   : > { %v1801_v6 = vpop.f32.mrf.mxu1  ;;  %3219 = vmatmul.msk.bf16.gmra.mxu2 %vm408_vm0, %v1902_v14  ;;  %v4689_v62 = vadd.f32 %v1564_v41, %v1385_v22 }
 0x223   : > { %3247 = vmatmul.msk.bf16.gmra.mxu3 %vm408_vm0, %v2136_v63 }
 0x224   : > { %3275 = vmatmul.msk.bf16.gmra.mxu0 %vm408_vm0, %v4418_v61  ;;  %v1903_v61 = vpack.c.bf16 %v1874_v39, %v1873_v32  ;;  %v1876_v32 = vld [vmem:[#allocation2 + $0x80] sm:$0xff] }
 0x225   : > { %v1099_v56 = vpop.f32.mrf.mxu2  ;;  %v2109_v39 = vld [vmem:[#allocation2 + $0x79] sm:$0xff] }
 0x226   : > { %v1333_v57 = vpop.f32.mrf.mxu3  ;;  %v1152_v28 = vadd.f32 %v1099_v56, %v4412_v4 }
 0x228   : > { %v1386_v26 = vadd.f32 %v1333_v57, %v1152_v28 }
 0x229   : > { %v1569_v42 = vpop.f32.mrf.mxu0 }
 0x22a   : > { %v4694_v25 = vpop.f32.mrf.mxu1  ;;  %v1620_v27 = vadd.f32 %v1567_v3, %v1386_v26 }
 0x22c   : > { %v4696_v51 = vadd.f32 %v1801_v6, %v1620_v27  ;;  %v1875_v27 = vld [vmem:[#allocation2 + $0x78] sm:$0xff] }
 0x22d   : > { %v1101_v41 = vpop.f32.mrf.mxu2 }
 0x22e   : > { %v1335_v36 = vpop.f32.mrf.mxu3  ;;  %v1153_v0 = vadd.f32 %v1101_v41, %v4416_v24 }
 0x230   : > { %v1387_v14 = vadd.f32 %v1335_v36, %v1153_v0  ;;  %v2138_v0 = vpack.c.bf16 %v2110_v48, %v2109_v39  ;;  %v2112_v39 = vld [vmem:[#allocation2 + $0x99] sm:$0xff] }
 0x231   : > { %v1572_v63 = vpop.f32.mrf.mxu0 }
 0x232   : > { %v1806_v4 = vpop.f32.mrf.mxu1  ;;  %3220 = vmatmul.msk.bf16.gmra.mxu2 %vm408_vm0, %v1903_v61  ;;  %v4701_v22 = vadd.f32 %v1569_v42, %v1387_v14 }
 0x233   : > { %3248 = vmatmul.msk.bf16.gmra.mxu3 %vm408_vm0, %v2137_v55 }
 0x234   : > { %3276 = vmatmul.msk.bf16.gmra.mxu0 %vm408_vm0, %v4436_v16  ;;  %v1904_v16 = vpack.c.bf16 %v1876_v32, %v1875_v27  ;;  %v1878_v27 = vld [vmem:[#allocation2 + $0x98] sm:$0xff] }
 0x235   : > { %v1104_v3 = vpop.f32.mrf.mxu2  ;;  %v2111_v32 = vld [vmem:[#allocation2 + $0x91] sm:$0xff] }
 0x236   : > { %v1338_v6 = vpop.f32.mrf.mxu3  ;;  %v1154_v56 = vadd.f32 %v1104_v3, %v4430_v29 }
 0x238   : > { %v1388_v57 = vadd.f32 %v1338_v6, %v1154_v56 }
 0x239   : > { %v1574_v24 = vpop.f32.mrf.mxu0 }
 0x23a   : > { %v4706_v28 = vpop.f32.mrf.mxu1  ;;  %v1622_v26 = vadd.f32 %v1572_v63, %v1388_v57 }
 0x23c   : > { %v4708_v47 = vadd.f32 %v1806_v4, %v1622_v26  ;;  %v1877_v26 = vld [vmem:[#allocation2 + $0x90] sm:$0xff] }
 0x23d   : > { %v1106_v42 = vpop.f32.mrf.mxu2 }
 0x23e   : > { %v1340_v41 = vpop.f32.mrf.mxu3  ;;  %v1155_v36 = vadd.f32 %v1106_v42, %v4434_v49 }
 0x240   : > { %v1389_v61 = vadd.f32 %v1340_v41, %v1155_v36  ;;  %v2139_v36 = vpack.c.bf16 %v2112_v39, %v2111_v32  ;;  %v2113_v32 = vld [vmem:[#allocation2 + $0xa9] sm:$0xff]  ;;  %v2114_v39 = vld [vmem:[#allocation2 + $0xb1] sm:$0xff] }
 0x241   : > { %v1577_v55 = vpop.f32.mrf.mxu0 }
 0x242   : > { %v1811_v29 = vpop.f32.mrf.mxu1  ;;  %3221 = vmatmul.msk.bf16.gmra.mxu2 %vm408_vm0, %v1904_v16  ;;  %v4713_v14 = vadd.f32 %v1574_v24, %v1389_v61 }
 0x243   : > { %3249 = vmatmul.msk.bf16.gmra.mxu3 %vm408_vm0, %v2138_v0 }
 0x244   : > { %3277 = vmatmul.msk.bf16.gmra.mxu0 %vm408_vm0, %v4454_v34  ;;  %v1905_v34 = vpack.c.bf16 %v1878_v27, %v1877_v26  ;;  %v1879_v26 = vld [vmem:[#allocation2 + $0xa8] sm:$0xff]  ;;  %v1880_v27 = vld [vmem:[#allocation2 + $0xb0] sm:$0xff] }
 0x245   : > { %v1109_v63 = vpop.f32.mrf.mxu2 }
 0x246   : > { %v1343_v4 = vpop.f32.mrf.mxu3  ;;  %v1156_v3 = vadd.f32 %v1109_v63, %v4448_v44  ;;  %v5111_v63 = vld [vmem:[#allocation31_spill] sm:$0xff] }
 0x248   : > { %v1390_v6 = vadd.f32 %v1343_v4, %v1156_v3 }
 0x249   : > { %v1579_v49 = vpop.f32.mrf.mxu0 }
 0x24a   : > { %v4718_v56 = vpop.f32.mrf.mxu1  ;;  %v1624_v57 = vadd.f32 %v1577_v55, %v1390_v6 }
 0x24b   : > { %5110 = vst [vmem:[#allocation41_spill] sm:$0xff] %v4718_v56 }
 0x24c   : > { %v4720_v48 = vadd.f32 %v1811_v29, %v1624_v57 }
 0x24d   : > { %v1111_v24 = vpop.f32.mrf.mxu2 }
 0x24e   : > { %v1345_v42 = vpop.f32.mrf.mxu3  ;;  %v1157_v41 = vadd.f32 %v1111_v24, %v4452_v60 }
 0x250   : > { %v1391_v16 = vadd.f32 %v1345_v42, %v1157_v41  ;;  %v5114_v41 = vld [vmem:[#allocation32_spill] sm:$0xff] }
 0x251   : > { %v1582_v0 = vpop.f32.mrf.mxu0 }
 0x252   : > { %v1816_v44 = vpop.f32.mrf.mxu1  ;;  %3222 = vmatmul.msk.bf16.gmra.mxu2 %vm408_vm0, %v1905_v34  ;;  %v4725_v61 = vadd.f32 %v1579_v49, %v1391_v16 }
 0x253   : > { %3250 = vmatmul.msk.bf16.gmra.mxu3 %vm408_vm0, %v2139_v36  ;;  %v2140_v36 = vpack.c.bf16 %v2114_v39, %v2113_v32  ;;  %v1882_v39 = vld [vmem:[#allocation2 + $0xc8] sm:$0xff] }
 0x254   : > { %3278 = vmatmul.msk.bf16.gmra.mxu0 %vm408_vm0, %v4472_v54  ;;  %v1906_v54 = vpack.c.bf16 %v1880_v27, %v1879_v26  ;;  %v1881_v27 = vld [vmem:[#allocation2 + $0xc0] sm:$0xff] }
 0x255   : > { %v1114_v55 = vpop.f32.mrf.mxu2 }
 0x256   : > { %v1348_v29 = vpop.f32.mrf.mxu3  ;;  %v1158_v4 = vadd.f32 %v1114_v55, %v5111_v63 }
 0x258   : > { %v1392_v3 = vadd.f32 %v1348_v29, %v1158_v4  ;;  %v5116_v29 = vld [vmem:[#allocation35_spill] sm:$0xff]  ;;  %v5117_v4 = vld [vmem:[#allocation33_spill] sm:$0xff] }
 0x259   : > { %v1584_v60 = vpop.f32.mrf.mxu0 }
 0x25a   : > { %v4730_v6 = vpop.f32.mrf.mxu1  ;;  %v1626_v57 = vadd.f32 %v1582_v0, %v1392_v3 }
 0x25b   : > { %5112 = vst [vmem:[#allocation31_spill] sm:$0xff] %v4730_v6 }
 0x25c   : > { %v4732_v24 = vadd.f32 %v1816_v44, %v1626_v57 }
 0x25d   : > { %v1116_v49 = vpop.f32.mrf.mxu2 }
 0x25e   : > { %5113 = vst [vmem:[#allocation42_spill] sm:$0xff] %v4732_v24  ;;  %v1350_v42 = vpop.f32.mrf.mxu3  ;;  %v1159_v34 = vadd.f32 %v1116_v49, %v5114_v41  ;;  %v2116_v41 = vld [vmem:[#allocation2 + $0xc9] sm:$0xff] }
 0x260   : > { %v1393_v16 = vadd.f32 %v1350_v42, %v1159_v34  ;;  %v2115_v42 = vld [vmem:[#allocation2 + $0xc1] sm:$0xff] }
 0x261   : > { %v1587_v56 = vpop.f32.mrf.mxu0  ;;  %v2141_v6 = vpack.c.bf16 %v2116_v41, %v2115_v42  ;;  %v1884_v42 = vld [vmem:[#allocation2 + $0xe0] sm:$0xff] }
 0x262   : > { %v1821_v55 = vpop.f32.mrf.mxu1  ;;  %3223 = vmatmul.msk.bf16.gmra.mxu2 %vm408_vm0, %v1906_v54  ;;  %v4737_v0 = vadd.f32 %v1584_v60, %v1393_v16  ;;  %v2117_v41 = vld [vmem:[#allocation2 + $0xd9] sm:$0xff] }
 0x263   : > { %3251 = vmatmul.msk.bf16.gmra.mxu3 %vm408_vm0, %v2140_v36  ;;  %v5120_v36 = vld [vmem:[#allocation34_spill] sm:$0xff] }
 0x264   : > { %5115 = vst [vmem:[#allocation32_spill] sm:$0xff] %v4737_v0  ;;  %3279 = vmatmul.msk.bf16.gmra.mxu0 %vm408_vm0, %v5116_v29  ;;  %v1907_v29 = vpack.c.bf16 %v1882_v39, %v1881_v27  ;;  %v1883_v39 = vld [vmem:[#allocation2 + $0xd8] sm:$0xff] }
 0x265   : > { %v1119_v44 = vpop.f32.mrf.mxu2 }
 0x266   : > { %v1353_v63 = vpop.f32.mrf.mxu3  ;;  %v1160_v3 = vadd.f32 %v1119_v44, %v5117_v4  ;;  %v5122_v44 = vld [vmem:[#allocation38_spill] sm:$0xff] }
 0x268   : > { %v1394_v57 = vadd.f32 %v1353_v63, %v1160_v3  ;;  %v5123_v3 = vld [vmem:[#allocation36_spill] sm:$0xff] }
 0x269   : > { %v1589_v49 = vpop.f32.mrf.mxu0 }
 0x26a   : > { %v1628_v26 = vadd.f32 %v1587_v56, %v1394_v57  ;;  %v4742_v32 = vpop.f32.mrf.mxu1 }
 0x26b   : > { %5118 = vst [vmem:[#allocation35_spill] sm:$0xff] %v4742_v32 }
 0x26c   : > { %v4744_v34 = vadd.f32 %v1821_v55, %v1628_v26 }
 0x26d   : > { %v1121_v60 = vpop.f32.mrf.mxu2 }
 0x26e   : > { %5119 = vst [vmem:[#allocation33_spill] sm:$0xff] %v4744_v34  ;;  %v1355_v54 = vpop.f32.mrf.mxu3  ;;  %v1161_v16 = vadd.f32 %v1121_v60, %v5120_v36 }
 0x270   : > { %v1395_v0 = vadd.f32 %v1355_v54, %v1161_v16  ;;  %v2118_v54 = vld [vmem:[#allocation2 + $0xe1] sm:$0xff] }
 0x271   : > { %v1592_v24 = vpop.f32.mrf.mxu0 }
 0x272   : > { %3224 = vmatmul.msk.bf16.gmra.mxu2 %vm408_vm0, %v1907_v29  ;;  %v4749_v56 = vadd.f32 %v1589_v49, %v1395_v0  ;;  %v1826_v63 = vpop.f32.mrf.mxu1  ;;  %v5124_v49 = vld [vmem:[#allocation37_spill] sm:$0xff]  ;;  %v1908_v29 = vpack.c.bf16 %v1884_v42, %v1883_v39  ;;  %v1885_v42 = vld [vmem:[#allocation2 + $0xf0] sm:$0xff] }
 0x273   : > { %3252 = vmatmul.msk.bf16.gmra.mxu3 %vm408_vm0, %v2141_v6 }
 0x274   : > { %5121 = vst [vmem:[#allocation34_spill] sm:$0xff] %v4749_v56  ;;  %3280 = vmatmul.msk.bf16.gmra.mxu0 %vm408_vm0, %v5122_v44  ;;  %v2142_v44 = vpack.c.bf16 %v2118_v54, %v2117_v41  ;;  %v1886_v41 = vld [vmem:[#allocation2 + $0xf8] sm:$0xff] }
 0x275   : > { %v1124_v55 = vpop.f32.mrf.mxu2  ;;  %v2119_v54 = vld [vmem:[#allocation2 + $0xf1] sm:$0xff] }
 0x276   : > { %v1358_v4 = vpop.f32.mrf.mxu3  ;;  %v1162_v57 = vadd.f32 %v1124_v55, %v5123_v3 }
 0x278   : > { %v1396_v26 = vadd.f32 %v1358_v4, %v1162_v57  ;;  %v5126_v4 = vld [vmem:[#allocation39_spill] sm:$0xff] }
 0x279   : > { %v1594_v60 = vpop.f32.mrf.mxu0 }
 0x27a   : > { %v1630_v27 = vadd.f32 %v1592_v24, %v1396_v26  ;;  %v4757_v32 = vpop.f32.mrf.mxu1 }
 0x27b   : > { %5125 = vst [vmem:[#allocation38_spill] sm:$0xff] %v4757_v32 }
 0x27c   : > { %v4754_v36 = vadd.f32 %v1826_v63, %v1630_v27 }
 0x27d   : > { %v1126_v6 = vpop.f32.mrf.mxu2 }
 0x27e   : > { %v1360_v0 = vpop.f32.mrf.mxu3  ;;  %v1163_v16 = vadd.f32 %v1126_v6, %v5124_v49  ;;  %v2120_v6 = vld [vmem:[#allocation2 + $0xf9] sm:$0xff] }
 0x280   : > { %v1397_v56 = vadd.f32 %v1360_v0, %v1163_v16 }
 0x281   : > { %v1597_v34 = vpop.f32.mrf.mxu0 }
 0x282   : > { %3225 = vmatmul.msk.bf16.gmra.mxu2 %vm408_vm0, %v1908_v29  ;;  %v4761_v24 = vadd.f32 %v1594_v60, %v1397_v56  ;;  %v1831_v27 = vpop.f32.mrf.mxu1  ;;  %v5127_v60 = vld [vmem:[#allocation40_spill] sm:$0xff]  ;;  %v1909_v29 = vpack.c.bf16 %v1886_v41, %v1885_v42  ;;  %v2121_v42 = vld [vmem:[#allocation2 + $0x109] sm:$0xff]  ;;  %v2122_v41 = vld [vmem:[#allocation2 + $0x111] sm:$0xff] }
 0x283   : > { %3253 = vmatmul.msk.bf16.gmra.mxu3 %vm408_vm0, %v2142_v44 }
 0x284   : > { %3281 = vmatmul.msk.bf16.gmra.mxu0 %vm408_vm0, %v4530_v17  ;;  %v2143_v17 = vpack.c.bf16 %v2120_v6, %v2119_v54 }
 0x285   : > { %v1129_v63 = vpop.f32.mrf.mxu2 }
 0x286   : > { %v1363_v55 = vpop.f32.mrf.mxu3  ;;  %v1164_v3 = vadd.f32 %v1129_v63, %v5126_v4 }
 0x288   : > { %v1398_v57 = vadd.f32 %v1363_v55, %v1164_v3 }
 0x289   : > { %v1599_v26 = vpop.f32.mrf.mxu0 }
 0x28a   : > { %v1632_v39 = vadd.f32 %v1597_v34, %v1398_v57 }
 0x28c   : > { %v4766_v0 = vadd.f32 %v1831_v27, %v1632_v39  ;;  %v1887_v27 = vld [vmem:[#allocation2 + $0x108] sm:$0xff]  ;;  %v1888_v39 = vld [vmem:[#allocation2 + $0x110] sm:$0xff] }
 0x28d   : > { %v1131_v49 = vpop.f32.mrf.mxu2 }
 0x28e   : > { %v1365_v56 = vpop.f32.mrf.mxu3  ;;  %v1165_v16 = vadd.f32 %v1131_v49, %v5127_v60  ;;  %v2144_v60 = vpack.c.bf16 %v2122_v41, %v2121_v42  ;;  %v1890_v42 = vld [vmem:[#allocation2 + $0x128] sm:$0xff] }
 0x28f   : > { %v2123_v41 = vld [vmem:[#allocation2 + $0x121] sm:$0xff] }
 0x290   : > { %v1399_v44 = vadd.f32 %v1365_v56, %v1165_v16  ;;  %v4778_v56 = vld [vmem:[%s342_s3] ss:$0 sm:$0xff] }
 0x291   : > { %v2459_v32 = vpop.f32.mrf.mxu0 }
 0x292   : > { %3226 = vmatmul.msk.bf16.gmra.mxu2 %vm408_vm0, %v1909_v29  ;;  %v4771_v34 = vadd.f32 %v1599_v26, %v1399_v44 }
 0x293   : > { %3254 = vmatmul.msk.bf16.gmra.mxu3 %vm408_vm0, %v2143_v17 }
 0x294   : > { %3282 = vmatmul.msk.bf16.gmra.mxu0 %vm408_vm0, %v4545_v8  ;;  %v1910_v8 = vpack.c.bf16 %v1888_v39, %v1887_v27 }
 0x295   : > { %v1991_v63 = vpop.f32.mrf.mxu2 }
 0x296   : > { %v2225_v55 = vpop.f32.mrf.mxu3  ;;  %v2071_v4 = vadd.f32 %v1991_v63, %v4543_v18 }
 0x298   : > { %v2305_v57 = vadd.f32 %v2225_v55, %v2071_v4 }
 0x299   : > { %v2461_v3 = vpop.f32.mrf.mxu0 }
 0x29a   : > { %v2539_v49 = vadd.f32 %v2459_v32, %v2305_v57 }
 0x29c   : > { %v2575_v18 = vadd.f32 %v4778_v56, %v2539_v49 }
 0x29d   : > { %v1993_v54 = vpop.f32.mrf.mxu2 }
 0x29e   : > { %v2227_v6 = vpop.f32.mrf.mxu3  ;;  %v2072_v26 = vadd.f32 %v1993_v54, %v4551_v50  ;;  %v2607_v50 = vmax.f32 %v2575_v18, 0.0  ;;  %v2124_v54 = vld [vmem:[#allocation2 + $0x129] sm:$0xff] }
 0x2a0   : > { %v2306_v16 = vadd.f32 %v2227_v6, %v2072_v26 }
 0x2a1   : > { %v2464_v29 = vpop.f32.mrf.mxu0 }
 0x2a2   : > { %v2540_v17 = vadd.f32 %v2461_v3, %v2306_v16  ;;  %3227 = vmatmul.msk.bf16.gmra.mxu2 %vm408_vm0, %v1910_v8  ;;  %v1889_v3 = vld [vmem:[#allocation2 + $0x120] sm:$0xff] }
 0x2a3   : > { %3255 = vmatmul.msk.bf16.gmra.mxu3 %vm408_vm0, %v2144_v60  ;;  %v1911_v8 = vpack.c.bf16 %v1890_v42, %v1889_v3  ;;  %v2145_v60 = vpack.c.bf16 %v2124_v54, %v2123_v41  ;;  %v2125_v3 = vld [vmem:[#allocation2 + $0x139] sm:$0xff]  ;;  %v2126_v42 = vld [vmem:[#allocation2 + $0x141] sm:$0xff] }
 0x2a4   : > { %v2576_v44 = vadd.f32 %v4778_v56, %v2540_v17  ;;  %3283 = vmatmul.msk.bf16.gmra.mxu0 %vm408_vm0, %v4561_v43 }
 0x2a5   : > { %v1996_v32 = vpop.f32.mrf.mxu2 }
 0x2a6   : > { %v2230_v63 = vpop.f32.mrf.mxu3  ;;  %v2608_v55 = vmax.f32 %v2576_v44, 0.0  ;;  %v2073_v4 = vadd.f32 %v1996_v32, %v4558_v19 }
 0x2a8   : > { %v2639_v57 = vpack.c.bf16 %v2608_v55, %v2607_v50  ;;  %v2307_v39 = vadd.f32 %v2230_v63, %v2073_v4 }
 0x2a9   : > { %v2466_v27 = vpop.f32.mrf.mxu0 }
 0x2aa   : > { %3298 = vmatmul.msk.bf16.vlgmr.msra.gmra.mxu1 %vm408_vm0, %v2639_v57  ;;  %v2541_v26 = vadd.f32 %v2464_v29, %v2307_v39  ;;  %v1892_v39 = vld [vmem:[#allocation2 + $0x140] sm:$0xff] }
 0x2ac   : > { %v2577_v19 = vadd.f32 %v4778_v56, %v2541_v26  ;;  %v2146_v26 = vpack.c.bf16 %v2126_v42, %v2125_v3 }
 0x2ad   : > { %v1998_v6 = vpop.f32.mrf.mxu2 }
 0x2ae   : > { %v2232_v49 = vpop.f32.mrf.mxu3  ;;  %v2074_v43 = vadd.f32 %v1998_v6, %v4567_v35  ;;  %v2609_v63 = vmax.f32 %v2577_v19, 0.0 }
 0x2b0   : > { %v2308_v16 = vadd.f32 %v2232_v49, %v2074_v43 }
 0x2b1   : > { %v2469_v18 = vpop.f32.mrf.mxu0 }
 0x2b2   : > { %v2542_v17 = vadd.f32 %v2466_v27, %v2308_v16  ;;  %3228 = vmatmul.msk.bf16.gmra.mxu2 %vm408_vm0, %v1911_v8  ;;  %v1891_v27 = vld [vmem:[#allocation2 + $0x138] sm:$0xff] }
 0x2b3   : > { %3256 = vmatmul.msk.bf16.gmra.mxu3 %vm408_vm0, %v2145_v60  ;;  %v1912_v49 = vpack.c.bf16 %v1892_v39, %v1891_v27 }
 0x2b4   : > { %v2578_v44 = vadd.f32 %v4778_v56, %v2542_v17  ;;  %3284 = vmatmul.msk.bf16.gmra.mxu0 %vm408_vm0, %v4577_v59 }
 0x2b5   : > { %v2001_v32 = vpop.f32.mrf.mxu2 }
 0x2b6   : > { %v2235_v29 = vpop.f32.mrf.mxu3  ;;  %v2610_v35 = vmax.f32 %v2578_v44, 0.0  ;;  %v2075_v50 = vadd.f32 %v2001_v32, %v4574_v40 }
 0x2b8   : > { %v2640_v55 = vpack.c.bf16 %v2610_v35, %v2609_v63  ;;  %v2309_v57 = vadd.f32 %v2235_v29, %v2075_v50  ;;  %v1893_v35 = vld [vmem:[#allocation2 + $0x150] sm:$0xff]  ;;  %v1894_v50 = vld [vmem:[#allocation2 + $0x158] sm:$0xff] }
 0x2b9   : > { %v2471_v4 = vpop.f32.mrf.mxu0  ;;  %v1913_v3 = vpack.c.bf16 %v1894_v50, %v1893_v35 }
 0x2ba   : > { %3299 = vmatmul.msk.bf16.gmra.mxu1 %vm408_vm0, %v2640_v55  ;;  %v2543_v6 = vadd.f32 %v2469_v18, %v2309_v57  ;;  %v2127_v55 = vld [vmem:[#allocation2 + $0x151] sm:$0xff] }
 0x2bc   : > { %v2579_v40 = vadd.f32 %v4778_v56, %v2543_v6 }
 0x2bd   : > { %v2003_v41 = vpop.f32.mrf.mxu2 }
 0x2be   : > { %v2237_v54 = vpop.f32.mrf.mxu3  ;;  %v2076_v59 = vadd.f32 %v2003_v41, %v4583_v30  ;;  %v2611_v17 = vmax.f32 %v2579_v40, 0.0 }
 0x2c0   : > { %v2310_v43 = vadd.f32 %v2237_v54, %v2076_v59 }
 0x2c1   : > { %v2474_v8 = vpop.f32.mrf.mxu0 }
 0x2c2   : > { %v2544_v60 = vadd.f32 %v2471_v4, %v2310_v43  ;;  %3229 = vmatmul.msk.bf16.gmra.mxu2 %vm408_vm0, %v1912_v49  ;;  %v2128_v4 = vld [vmem:[#allocation2 + $0x159] sm:$0xff] }
 0x2c3   : > { %3257 = vmatmul.msk.bf16.gmra.mxu3 %vm408_vm0, %v2146_v26  ;;  %v2147_v42 = vpack.c.bf16 %v2128_v4, %v2127_v55 }
 0x2c4   : > { %v2580_v16 = vadd.f32 %v4778_v56, %v2544_v60  ;;  %3285 = vmatmul.msk.bf16.gmra.mxu0 %vm408_vm0, %v4593_v20 }
 0x2c5   : > { %v2006_v19 = vpop.f32.mrf.mxu2 }
 0x2c6   : > { %v2240_v18 = vpop.f32.mrf.mxu3  ;;  %v2612_v30 = vmax.f32 %v2580_v16, 0.0  ;;  %v2077_v44 = vadd.f32 %v2006_v19, %v4590_v2  ;;  %v1895_v19 = vld [vmem:[#allocation2 + $0x168] sm:$0xff] }
 0x2c8   : > { %v2641_v32 = vpack.c.bf16 %v2612_v30, %v2611_v17  ;;  %v2311_v63 = vadd.f32 %v2240_v18, %v2077_v44  ;;  %v1896_v18 = vld [vmem:[#allocation2 + $0x170] sm:$0xff]  ;;  %v1845_v44 = vadd.f32 %v4609_v52, %v4621_v38 }
 0x2c9   : > { %v2476_v29 = vpop.f32.mrf.mxu0  ;;  %v2129_v17 = vld [vmem:[#allocation2 + $0x169] sm:$0xff]  ;;  %v2130_v30 = vld [vmem:[#allocation2 + $0x171] sm:$0xff]  ;;  %v1914_v35 = vpack.c.bf16 %v1896_v18, %v1895_v19 }
 0x2ca   : > { %3300 = vmatmul.msk.bf16.gmra.mxu1 %vm408_vm0, %v2641_v32  ;;  %v2545_v39 = vadd.f32 %v2474_v8, %v2311_v63  ;;  %v2148_v50 = vpack.c.bf16 %v2130_v30, %v2129_v17  ;;  %v1900_v30 = vld [vmem:[#allocation2 + $0x1a0] sm:$0xff] }
 0x2cc   : > { %v2581_v2 = vadd.f32 %v4778_v56, %v2545_v39 }
 0x2cd   : > { %v2008_v57 = vpop.f32.mrf.mxu2 }
 0x2ce   : > { %v2242_v27 = vpop.f32.mrf.mxu3  ;;  %v2078_v20 = vadd.f32 %v2008_v57, %v4599_v23  ;;  %v2613_v43 = vmax.f32 %v2581_v2, 0.0  ;;  %v1847_v2 = vadd.f32 %v4628_v15, %v4639_v10 }
 0x2d0   : > { %v2312_v41 = vadd.f32 %v2242_v27, %v2078_v20 }
 0x2d1   : > { %v2479_v54 = vpop.f32.mrf.mxu0 }
 0x2d2   : > { %v2546_v6 = vadd.f32 %v2476_v29, %v2312_v41  ;;  %3230 = vmatmul.msk.bf16.gmra.mxu2 %vm408_vm0, %v1913_v3 }
 0x2d3   : > { %3258 = vmatmul.msk.bf16.gmra.mxu3 %vm408_vm0, %v2147_v42 }
 0x2d4   : > { %v2582_v59 = vadd.f32 %v4778_v56, %v2546_v6  ;;  %3286 = vmatmul.msk.bf16.gmra.mxu0 %vm408_vm0, %v4615_v12 }
 0x2d5   : > { %v2011_v49 = vpop.f32.mrf.mxu2 }
 0x2d6   : > { %v2245_v26 = vpop.f32.mrf.mxu3  ;;  %v2614_v23 = vmax.f32 %v2582_v59, 0.0  ;;  %v2079_v8 = vadd.f32 %v2011_v49, %v4612_v46 }
 0x2d8   : > { %v2642_v40 = vpack.c.bf16 %v2614_v23, %v2613_v43  ;;  %v2313_v16 = vadd.f32 %v2245_v26, %v2079_v8 }
 0x2d9   : > { %v2481_v60 = vpop.f32.mrf.mxu0 }
 0x2da   : > { %3301 = vmatmul.msk.bf16.gmra.mxu1 %vm408_vm0, %v2642_v40  ;;  %v2547_v29 = vadd.f32 %v2479_v54, %v2313_v16 }
 0x2dc   : > { %v2583_v4 = vadd.f32 %v4778_v56, %v2547_v29  ;;  %v2367_v29 = vld [vmem:[#allocation2 + $0x19a] sm:$0xff] }
 0x2dd   : > { %v2013_v32 = vpop.f32.mrf.mxu2 }
 0x2de   : > { %v2247_v12 = vpop.f32.mrf.mxu3  ;;  %v2080_v63 = vadd.f32 %v2013_v32, %v1845_v44  ;;  %v2615_v39 = vmax.f32 %v2583_v4, 0.0  ;;  %v2133_v44 = vld [vmem:[#allocation2 + $0x199] sm:$0xff]  ;;  %v1849_v32 = vadd.f32 %v4646_v45, %v4661_v21 }
 0x2e0   : > { %v2314_v55 = vadd.f32 %v2247_v12, %v2080_v63  ;;  %v2368_v63 = vld [vmem:[#allocation2 + $0x1a2] sm:$0xff] }
 0x2e1   : > { %v2484_v46 = vpop.f32.mrf.mxu0  ;;  %v2384_v4 = vpack.c.bf16 %v2368_v63, %v2367_v29  ;;  %v4865_v29 = vld [vmem:[%s361_s10] ss:$0 sm:$0xff] }
 0x2e2   : > { %v2548_v57 = vadd.f32 %v2481_v60, %v2314_v55  ;;  %3231 = vmatmul.msk.bf16.gmra.mxu2 %vm408_vm0, %v1914_v35 }
 0x2e3   : > { %3259 = vmatmul.msk.bf16.gmra.mxu3 %vm408_vm0, %v2148_v50 }
 0x2e4   : > { %v2584_v27 = vadd.f32 %v4778_v56, %v2548_v57  ;;  %3287 = vmatmul.msk.bf16.gmra.mxu0 %vm408_vm0, %v4633_v33 }
 0x2e5   : > { %v2016_v52 = vpop.f32.mrf.mxu2 }
 0x2e6   : > { %v2250_v38 = vpop.f32.mrf.mxu3  ;;  %v2616_v20 = vmax.f32 %v2584_v27, 0.0  ;;  %v2081_v3 = vadd.f32 %v2016_v52, %v4630_v11 }
 0x2e8   : > { %v2643_v42 = vpack.c.bf16 %v2616_v20, %v2615_v39  ;;  %v2315_v54 = vadd.f32 %v2250_v38, %v2081_v3 }
 0x2e9   : > { %v2486_v41 = vpop.f32.mrf.mxu0 }
 0x2ea   : > { %3302 = vmatmul.msk.bf16.gmra.mxu1 %vm408_vm0, %v2643_v42  ;;  %v2549_v49 = vadd.f32 %v2484_v46, %v2315_v54 }
 0x2ec   : > { %v2585_v23 = vadd.f32 %v4778_v56, %v2549_v49 }
 0x2ed   : > { %v2018_v6 = vpop.f32.mrf.mxu2 }
 0x2ee   : > { %v2252_v59 = vpop.f32.mrf.mxu3  ;;  %v2082_v26 = vadd.f32 %v2018_v6, %v1847_v2  ;;  %v2617_v40 = vmax.f32 %v2585_v23, 0.0  ;;  %v1851_v2 = vadd.f32 %v4668_v58, %v4676_v13 }
 0x2f0   : > { %v2316_v43 = vadd.f32 %v2252_v59, %v2082_v26 }
 0x2f1   : > { %v2489_v33 = vpop.f32.mrf.mxu0 }
 0x2f2   : > { %v2550_v8 = vadd.f32 %v2486_v41, %v2316_v43  ;;  %3232 = vmatmul.msk.bf16.gmra.mxu2 %vm408_vm0, %v4651_v7  ;;  %v1899_v7 = vld [vmem:[#allocation2 + $0x198] sm:$0xff] }
 0x2f3   : > { %3260 = vmatmul.msk.bf16.gmra.mxu3 %vm408_vm0, %v4653_v1  ;;  %v2134_v1 = vld [vmem:[#allocation2 + $0x1a1] sm:$0xff]  ;;  %v1916_v55 = vpack.c.bf16 %v1900_v30, %v1899_v7 }
 0x2f4   : > { %v2586_v11 = vadd.f32 %v4778_v56, %v2550_v8  ;;  %3288 = vmatmul.msk.bf16.gmra.mxu0 %vm408_vm0, %v4655_v53 }
 0x2f5   : > { %v2021_v15 = vpop.f32.mrf.mxu2 }
 0x2f6   : > { %v2255_v10 = vpop.f32.mrf.mxu3  ;;  %v2618_v60 = vmax.f32 %v2586_v11, 0.0  ;;  %v2083_v16 = vadd.f32 %v2021_v15, %v4648_v37  ;;  %v2150_v37 = vpack.c.bf16 %v2134_v1, %v2133_v44  ;;  %v4856_v44 = vpop.f32.mrf.mxu1 }
 0x2f8   : > { %v2644_v19 = vpack.c.bf16 %v2618_v60, %v2617_v40  ;;  %v2317_v17 = vadd.f32 %v2255_v10, %v2083_v16 }
 0x2f9   : > { %v2491_v18 = vpop.f32.mrf.mxu0 }
 0x2fa   : > { %3303 = vmatmul.msk.bf16.gmra.mxu1 %vm408_vm0, %v2644_v19  ;;  %v2551_v35 = vadd.f32 %v2489_v33, %v2317_v17  ;;  %v1853_v19 = vadd.f32 %v4681_v9, %v4689_v62 }
 0x2fc   : > { %v2587_v27 = vadd.f32 %v4778_v56, %v2551_v35 }
 0x2fd   : > { %v2023_v12 = vpop.f32.mrf.mxu2 }
 0x2fe   : > { %v2257_v53 = vpop.f32.mrf.mxu3  ;;  %v2084_v50 = vadd.f32 %v2023_v12, %v1849_v32  ;;  %v2619_v39 = vmax.f32 %v2587_v27, 0.0  ;;  %v1855_v27 = vadd.f32 %v4694_v25, %v4701_v22 }
 0x300   : > { %v2318_v46 = vadd.f32 %v2257_v53, %v2084_v50 }
 0x301   : > { %v2494_v57 = vpop.f32.mrf.mxu0 }
 0x302   : > { %v2552_v52 = vadd.f32 %v2491_v18, %v2318_v46  ;;  %3233 = vmatmul.msk.bf16.gmra.mxu2 %vm408_vm0, %v1916_v55 }
 0x303   : > { %3261 = vmatmul.msk.bf16.gmra.mxu3 %vm408_vm0, %v2150_v37 }
 0x304   : > { %v2588_v45 = vadd.f32 %v4778_v56, %v2552_v52  ;;  %3289 = vmatmul.msk.bf16.gmra.mxu0 %vm408_vm0, %v2384_v4 }
 0x305   : > { %v2026_v21 = vpop.f32.mrf.mxu2 }
 0x306   : > { %v2260_v38 = vpop.f32.mrf.mxu3  ;;  %v2620_v20 = vmax.f32 %v2588_v45, 0.0  ;;  %v2085_v3 = vadd.f32 %v2026_v21, %v4671_v5 }
 0x308   : > { %v2645_v42 = vpack.c.bf16 %v2620_v20, %v2619_v39  ;;  %v2319_v54 = vadd.f32 %v2260_v38, %v2085_v3 }
 0x309   : > { %v2496_v41 = vpop.f32.mrf.mxu0 }
 0x30a   : > { %3304 = vmatmul.msk.bf16.gmra.mxu1 %vm408_vm0, %v2645_v42  ;;  %v2553_v49 = vadd.f32 %v2494_v57, %v2319_v54 }
 0x30c   : > { %v2589_v23 = vadd.f32 %v4778_v56, %v2553_v49 }
 0x30d   : > { %v2028_v6 = vpop.f32.mrf.mxu2 }
 0x30e   : > { %v2262_v59 = vpop.f32.mrf.mxu3  ;;  %v2086_v26 = vadd.f32 %v2028_v6, %v1851_v2  ;;  %v2621_v10 = vmax.f32 %v2589_v23, 0.0 }
 0x310   : > { %v2320_v43 = vadd.f32 %v2262_v59, %v2086_v26 }
 0x311   : > { %v2499_v33 = vpop.f32.mrf.mxu0 }
 0x312   : > { %v2554_v8 = vadd.f32 %v2496_v41, %v2320_v43 }
 0x314   : > { %v2590_v11 = vadd.f32 %v4778_v56, %v2554_v8  ;;  %v1857_v8 = vadd.f32 %v4706_v28, %v4713_v14 }
 0x315   : > { %v2031_v5 = vpop.f32.mrf.mxu2 }
 0x316   : > { %v2265_v15 = vpop.f32.mrf.mxu3  ;;  %v2622_v40 = vmax.f32 %v2590_v11, 0.0  ;;  %v2087_v60 = vadd.f32 %v2031_v5, %v4685_v31 }
 0x318   : > { %v2646_v16 = vpack.c.bf16 %v2622_v40, %v2621_v10  ;;  %v2321_v13 = vadd.f32 %v2265_v15, %v2087_v60 }
 0x319   : > { %v2501_v58 = vpop.f32.mrf.mxu0 }
 0x31a   : > { %3305 = vmatmul.msk.bf16.gmra.mxu1 %vm408_vm0, %v2646_v16  ;;  %v2555_v7 = vadd.f32 %v2499_v33, %v2321_v13 }
 0x31c   : > { %v2591_v31 = vadd.f32 %v4778_v56, %v2555_v7 }
 0x31d   : > { %v2033_v18 = vpop.f32.mrf.mxu2 }
 0x31e   : > { %v2267_v17 = vpop.f32.mrf.mxu3  ;;  %v2088_v30 = vadd.f32 %v2033_v18, %v1853_v19  ;;  %v2623_v63 = vmax.f32 %v2591_v31, 0.0 }
 0x320   : > { %v2322_v1 = vadd.f32 %v2267_v17, %v2088_v30 }
 0x321   : > { %v2504_v32 = vpop.f32.mrf.mxu0 }
 0x322   : > { %v2556_v12 = vadd.f32 %v2501_v58, %v2322_v1 }
 0x324   : > { %v2592_v53 = vadd.f32 %v4778_v56, %v2556_v12 }
 0x325   : > { %v2036_v9 = vpop.f32.mrf.mxu2 }
 0x326   : > { %v2270_v62 = vpop.f32.mrf.mxu3  ;;  %v2624_v35 = vmax.f32 %v2592_v53, 0.0  ;;  %v2089_v50 = vadd.f32 %v2036_v9, %v4696_v51  ;;  %v5128_v53 = vld [vmem:[#allocation41_spill] sm:$0xff] }
 0x327   : > { %v2732_v55 = vpop.f32.mrf.mxu1  ;;  %v1859_v9 = vadd.f32 %v5128_v53, %v4725_v61 }
 0x328   : > { %v2647_v37 = vpack.c.bf16 %v2624_v35, %v2623_v63  ;;  %v2733_v46 = vadd.f32 %v4865_v29, %v2732_v55  ;;  %v2323_v57 = vadd.f32 %v2270_v62, %v2089_v50 }
 0x329   : > { %v2506_v4 = vpop.f32.mrf.mxu0 }
 0x32a   : > { %2812 = vst [vmem:[%s4869_s17] sm:$0xff] %v2733_v46  ;;  %3306 = vmatmul.msk.bf16.gmra.mxu1 %vm408_vm0, %v2647_v37  ;;  %v2557_v21 = vadd.f32 %v2504_v32, %v2323_v57 }
 0x32c   : > { %v2593_v42 = vadd.f32 %v4778_v56, %v2557_v21 }
 0x32d   : > { %v2038_v52 = vpop.f32.mrf.mxu2 }
 0x32e   : > { %v2272_v45 = vpop.f32.mrf.mxu3  ;;  %v2090_v51 = vadd.f32 %v2038_v52, %v1855_v27  ;;  %v2625_v59 = vmax.f32 %v2593_v42, 0.0 }
 0x32f   : > { %v2734_v38 = vpop.f32.mrf.mxu1 }
 0x330   : > { %v2324_v39 = vadd.f32 %v2272_v45, %v2090_v51  ;;  %v2735_v20 = vadd.f32 %v4865_v29, %v2734_v38  ;;  %v5129_v51 = vld [vmem:[#allocation42_spill] sm:$0xff] }
 0x331   : > { %v2509_v3 = vpop.f32.mrf.mxu0 }
 0x332   : > { %v2558_v41 = vadd.f32 %v2506_v4, %v2324_v39  ;;  %2813 = vst [vmem:[%s4869_s17 + $0x8] sm:$0xff] %v2735_v20 }
 0x334   : > { %v2594_v54 = vadd.f32 %v4778_v56, %v2558_v41 }
 0x335   : > { %v2041_v2 = vpop.f32.mrf.mxu2 }
 0x336   : > { %v2275_v6 = vpop.f32.mrf.mxu3  ;;  %v2626_v25 = vmax.f32 %v2594_v54, 0.0  ;;  %v2091_v22 = vadd.f32 %v2041_v2, %v4708_v47  ;;  %v5130_v54 = vld [vmem:[#allocation32_spill] sm:$0xff]  ;;  %v5131_v2 = vld [vmem:[#allocation31_spill] sm:$0xff] }
 0x337   : > { %v2737_v49 = vpop.f32.mrf.mxu1 }
 0x338   : > { %v2648_v26 = vpack.c.bf16 %v2626_v25, %v2625_v59  ;;  %v2738_v43 = vadd.f32 %v4865_v29, %v2737_v49  ;;  %v2325_v23 = vadd.f32 %v2275_v6, %v2091_v22  ;;  %v1861_v6 = vadd.f32 %v5131_v2, %v5130_v54 }
 0x339   : > { %v2511_v33 = vpop.f32.mrf.mxu0 }
 0x33a   : > { %2814 = vst [vmem:[%s4869_s17 + $0x10] sm:$0xff] %v2738_v43  ;;  %3307 = vmatmul.msk.bf16.gmra.mxu1 %vm408_vm0, %v2648_v26  ;;  %v2559_v15 = vadd.f32 %v2509_v3, %v2325_v23 }
 0x33c   : > { %v2595_v58 = vadd.f32 %v4778_v56, %v2559_v15 }
 0x33d   : > { %v2043_v11 = vpop.f32.mrf.mxu2 }
 0x33e   : > { %v2277_v5 = vpop.f32.mrf.mxu3  ;;  %v2092_v10 = vadd.f32 %v2043_v11, %v1857_v8  ;;  %v2627_v7 = vmax.f32 %v2595_v58, 0.0 }
 0x33f   : > { %v2739_v40 = vpop.f32.mrf.mxu1 }
 0x340   : > { %v2326_v60 = vadd.f32 %v2277_v5, %v2092_v10  ;;  %v2740_v47 = vadd.f32 %v4865_v29, %v2739_v40 }
 0x341   : > { %v2514_v16 = vpop.f32.mrf.mxu0 }
 0x342   : > { %v2560_v13 = vadd.f32 %v2511_v33, %v2326_v60  ;;  %2815 = vst [vmem:[%s4869_s17 + $0x18] sm:$0xff] %v2740_v47  ;;  %v5132_v47 = vld [vmem:[#allocation33_spill] sm:$0xff] }
 0x344   : > { %v2596_v19 = vadd.f32 %v4778_v56, %v2560_v13 }
 0x345   : > { %v2046_v18 = vpop.f32.mrf.mxu2 }
 0x346   : > { %v2280_v17 = vpop.f32.mrf.mxu3  ;;  %v2628_v28 = vmax.f32 %v2596_v19, 0.0  ;;  %v2093_v14 = vadd.f32 %v2046_v18, %v4720_v48 }
 0x347   : > { %v2742_v30 = vpop.f32.mrf.mxu1 }
 0x348   : > { %v2649_v1 = vpack.c.bf16 %v2628_v28, %v2627_v7  ;;  %v2743_v32 = vadd.f32 %v4865_v29, %v2742_v30  ;;  %v2327_v12 = vadd.f32 %v2280_v17, %v2093_v14  ;;  %v5133_v7 = vld [vmem:[#allocation34_spill] sm:$0xff]  ;;  %v5134_v28 = vld [vmem:[#allocation35_spill] sm:$0xff] }
 0x349   : > { %v2516_v31 = vpop.f32.mrf.mxu0  ;;  %v1863_v14 = vadd.f32 %v5134_v28, %v5133_v7 }
 0x34a   : > { %2816 = vst [vmem:[%s4869_s17 + $0x20] sm:$0xff] %v2743_v32  ;;  %3308 = vmatmul.msk.bf16.gmra.mxu1 %vm408_vm0, %v2649_v1  ;;  %v2561_v35 = vadd.f32 %v2514_v16, %v2327_v12 }
 0x34c   : > { %v2597_v4 = vadd.f32 %v4778_v56, %v2561_v35 }
 0x34d   : > { %v2048_v62 = vpop.f32.mrf.mxu2 }
 0x34e   : > { %v2282_v63 = vpop.f32.mrf.mxu3  ;;  %v2094_v50 = vadd.f32 %v2048_v62, %v1859_v9  ;;  %v2629_v21 = vmax.f32 %v2597_v4, 0.0 }
 0x34f   : > { %v2744_v55 = vpop.f32.mrf.mxu1 }
 0x350   : > { %v2328_v37 = vadd.f32 %v2282_v63, %v2094_v50  ;;  %v2745_v48 = vadd.f32 %v4865_v29, %v2744_v55 }
 0x351   : > { %v2519_v46 = vpop.f32.mrf.mxu0 }
 0x352   : > { %v2562_v57 = vadd.f32 %v2516_v31, %v2328_v37  ;;  %2817 = vst [vmem:[%s4869_s17 + $0x28] sm:$0xff] %v2745_v48 }
 0x354   : > { %v2598_v27 = vadd.f32 %v4778_v56, %v2562_v57 }
 0x355   : > { %v2051_v52 = vpop.f32.mrf.mxu2 }
 0x356   : > { %v2285_v45 = vpop.f32.mrf.mxu3  ;;  %v2630_v61 = vmax.f32 %v2598_v27, 0.0  ;;  %v2095_v38 = vadd.f32 %v2051_v52, %v5129_v51 }
 0x357   : > { %v2747_v39 = vpop.f32.mrf.mxu1 }
 0x358   : > { %v2650_v20 = vpack.c.bf16 %v2630_v61, %v2629_v21  ;;  %v2748_v3 = vadd.f32 %v4865_v29, %v2747_v39  ;;  %v2329_v41 = vadd.f32 %v2285_v45, %v2095_v38  ;;  %v5135_v21 = vld [vmem:[#allocation38_spill] sm:$0xff] }
 0x359   : > { %v2521_v42 = vpop.f32.mrf.mxu0  ;;  %v1865_v61 = vadd.f32 %v5135_v21, %v4761_v24 }
 0x35a   : > { %2818 = vst [vmem:[%s4869_s17 + $0x30] sm:$0xff] %v2748_v3  ;;  %3309 = vmatmul.msk.bf16.gmra.mxu1 %vm408_vm0, %v2650_v20  ;;  %v2563_v22 = vadd.f32 %v2519_v46, %v2329_v41 }
 0x35c   : > { %v2599_v8 = vadd.f32 %v4778_v56, %v2563_v22 }
 0x35d   : > { %v2053_v59 = vpop.f32.mrf.mxu2 }
 0x35e   : > { %v2287_v25 = vpop.f32.mrf.mxu3  ;;  %v2096_v49 = vadd.f32 %v2053_v59, %v1861_v6  ;;  %v2631_v40 = vmax.f32 %v2599_v8, 0.0 }
 0x35f   : > { %v2749_v26 = vpop.f32.mrf.mxu1 }
 0x360   : > { %v2330_v43 = vadd.f32 %v2287_v25, %v2096_v49  ;;  %v2750_v33 = vadd.f32 %v4865_v29, %v2749_v26 }
 0x361   : > { %v2524_v23 = vpop.f32.mrf.mxu0 }
 0x362   : > { %v2564_v11 = vadd.f32 %v2521_v42, %v2330_v43  ;;  %2819 = vst [vmem:[%s4869_s17 + $0x38] sm:$0xff] %v2750_v33 }
 0x364   : > { %v2600_v5 = vadd.f32 %v4778_v56, %v2564_v11  ;;  %v1867_v11 = vadd.f32 %v4856_v44, %v4771_v34 }
 0x365   : > { %v2056_v15 = vpop.f32.mrf.mxu2 }
 0x366   : > { %v2290_v10 = vpop.f32.mrf.mxu3  ;;  %v2632_v60 = vmax.f32 %v2600_v5, 0.0  ;;  %v2097_v16 = vadd.f32 %v2056_v15, %v5132_v47 }
 0x367   : > { %v2752_v58 = vpop.f32.mrf.mxu1 }
 0x368   : > { %v2651_v13 = vpack.c.bf16 %v2632_v60, %v2631_v40  ;;  %v2753_v19 = vadd.f32 %v4865_v29, %v2752_v58  ;;  %v2331_v17 = vadd.f32 %v2290_v10, %v2097_v16 }
 0x369   : > { %v2526_v18 = vpop.f32.mrf.mxu0 }
 0x36a   : > { %2820 = vst [vmem:[%s4869_s17 + $0x40] sm:$0xff] %v2753_v19  ;;  %3310 = vmatmul.msk.bf16.gmra.mxu1 %vm408_vm0, %v2651_v13  ;;  %v2565_v32 = vadd.f32 %v2524_v23, %v2331_v17 }
 0x36c   : > { %v2601_v62 = vadd.f32 %v4778_v56, %v2565_v32 }
 0x36d   : > { %v2058_v30 = vpop.f32.mrf.mxu2 }
 0x36e   : > { %v2292_v1 = vpop.f32.mrf.mxu3  ;;  %v2098_v31 = vadd.f32 %v2058_v30, %v1863_v14  ;;  %v2633_v48 = vmax.f32 %v2601_v62, 0.0 }
 0x36f   : > { %v2754_v12 = vpop.f32.mrf.mxu1 }
 0x370   : > { %v2332_v53 = vadd.f32 %v2292_v1, %v2098_v31  ;;  %v2755_v9 = vadd.f32 %v4865_v29, %v2754_v12 }
 0x371   : > { %v2529_v35 = vpop.f32.mrf.mxu0 }
 0x372   : > { %v2566_v63 = vadd.f32 %v2526_v18, %v2332_v53  ;;  %2821 = vst [vmem:[%s4869_s17 + $0x48] sm:$0xff] %v2755_v9 }
 0x374   : > { %v2602_v50 = vadd.f32 %v4778_v56, %v2566_v63 }
 0x375   : > { %v2061_v55 = vpop.f32.mrf.mxu2 }
 0x376   : > { %v2295_v37 = vpop.f32.mrf.mxu3  ;;  %v2634_v46 = vmax.f32 %v2602_v50, 0.0  ;;  %v2099_v4 = vadd.f32 %v2061_v55, %v4754_v36 }
 0x377   : > { %v2757_v57 = vpop.f32.mrf.mxu1 }
 0x378   : > { %v2652_v27 = vpack.c.bf16 %v2634_v46, %v2633_v48  ;;  %v2758_v52 = vadd.f32 %v4865_v29, %v2757_v57  ;;  %v2333_v45 = vadd.f32 %v2295_v37, %v2099_v4 }
 0x379   : > { %v2531_v51 = vpop.f32.mrf.mxu0 }
 0x37a   : > { %2822 = vst [vmem:[%s4869_s17 + $0x50] sm:$0xff] %v2758_v52  ;;  %3311 = vmatmul.msk.bf16.gmra.mxu1 %vm408_vm0, %v2652_v27  ;;  %v2567_v20 = vadd.f32 %v2529_v35, %v2333_v45 }
 0x37c   : > { %v2603_v54 = vadd.f32 %v4778_v56, %v2567_v20 }
 0x37d   : > { %v2063_v38 = vpop.f32.mrf.mxu2 }
 0x37e   : > { %v2297_v39 = vpop.f32.mrf.mxu3  ;;  %v2100_v3 = vadd.f32 %v2063_v38, %v1865_v61  ;;  %v2635_v22 = vmax.f32 %v2603_v54, 0.0 }
 0x37f   : > { %v2759_v42 = vpop.f32.mrf.mxu1 }
 0x380   : > { %v2334_v41 = vadd.f32 %v2297_v39, %v2100_v3  ;;  %v2760_v36 = vadd.f32 %v4865_v29, %v2759_v42 }
 0x381   : > { %v2534_v26 = vpop.f32.mrf.mxu0 }
 0x382   : > { %v2568_v2 = vadd.f32 %v2531_v51, %v2334_v41  ;;  %2823 = vst [vmem:[%s4869_s17 + $0x58] sm:$0xff] %v2760_v36 }
 0x384   : > { %v2604_v6 = vadd.f32 %v4778_v56, %v2568_v2 }
 0x385   : > { %v2066_v59 = vpop.f32.mrf.mxu2 }
 0x386   : > { %v2300_v25 = vpop.f32.mrf.mxu3  ;;  %v2636_v24 = vmax.f32 %v2604_v6, 0.0  ;;  %v2101_v49 = vadd.f32 %v2066_v59, %v4766_v0 }
 0x387   : > { %v2762_v43 = vpop.f32.mrf.mxu1 }
 0x388   : > { %v2653_v33 = vpack.c.bf16 %v2636_v24, %v2635_v22  ;;  %v2763_v23 = vadd.f32 %v4865_v29, %v2762_v43  ;;  %v2335_v8 = vadd.f32 %v2300_v25, %v2101_v49 }
 0x389   : > { %v2536_v16 = vpop.f32.mrf.mxu0 }
 0x38a   : > { %2824 = vst [vmem:[%s4869_s17 + $0x60] sm:$0xff] %v2763_v23  ;;  %3312 = vmatmul.msk.bf16.gmra.mxu1 %vm408_vm0, %v2653_v33  ;;  %v2569_v15 = vadd.f32 %v2534_v26, %v2335_v8 }
 0x38c   : > { %v2605_v58 = vadd.f32 %v4778_v56, %v2569_v15 }
 0x38d   : > { %v2068_v5 = vpop.f32.mrf.mxu2 }
 0x38e   : > { %v2102_v10 = vadd.f32 %v2068_v5, %v1867_v11  ;;  %v2302_v40 = vpop.f32.mrf.mxu3  ;;  %v2637_v34 = vmax.f32 %v2605_v58, 0.0 }
 0x38f   : > { %v2764_v60 = vpop.f32.mrf.mxu1 }
 0x390   : > { %v2336_v0 = vadd.f32 %v2302_v40, %v2102_v10  ;;  %v2765_v47 = vadd.f32 %v4865_v29, %v2764_v60 }
 0x392   : > { %v2570_v13 = vadd.f32 %v2536_v16, %v2336_v0  ;;  %2825 = vst [vmem:[%s4869_s17 + $0x68] sm:$0xff] %v2765_v47 }
 0x394   : > { %v2606_v19 = vadd.f32 %v4778_v56, %v2570_v13 }
 0x396   : > { %v2638_v44 = vmax.f32 %v2606_v19, 0.0 }
 0x397   : > { %v2767_v18 = vpop.f32.mrf.mxu1 }
 0x398   : > { %v2654_v17 = vpack.c.bf16 %v2638_v44, %v2637_v34  ;;  %v2768_v7 = vadd.f32 %v4865_v29, %v2767_v18 }
 0x39a   : > { %2826 = vst [vmem:[%s4869_s17 + $0x70] sm:$0xff] %v2768_v7  ;;  %3313 = vmatmul.msk.bf16.gmra.mxu1 %vm408_vm0, %v2654_v17 }
 0x39f   : > { %v2769_v28 = vpop.f32.mrf.mxu1 }
 0x3a0   : > { %v2770_v14 = vadd.f32 %v4865_v29, %v2769_v28 }
 0x3a2   : > { %2827 = vst [vmem:[%s4869_s17 + $0x78] sm:$0xff] %v2770_v14 }
 0x3a7   : > { %v2772_v30 = vpop.f32.mrf.mxu1 }
 0x3a8   : > { %v2773_v56 = vadd.f32 %v4865_v29, %v2772_v30 }
 0x3aa   : > { %2828 = vst [vmem:[%s4869_s17 + $0x80] sm:$0xff] %v2773_v56 }
 0x3af   : > { %v2774_v1 = vpop.f32.mrf.mxu1 }
 0x3b0   : > { %v2775_v32 = vadd.f32 %v4865_v29, %v2774_v1 }
 0x3b2   : > { %2829 = vst [vmem:[%s4869_s17 + $0x88] sm:$0xff] %v2775_v32 }
 0x3b7   : > { %v2777_v31 = vpop.f32.mrf.mxu1 }
 0x3b8   : > { %v2778_v12 = vadd.f32 %v4865_v29, %v2777_v31 }
 0x3ba   : > { %2830 = vst [vmem:[%s4869_s17 + $0x90] sm:$0xff] %v2778_v12 }
 0x3bf   : > { %v2779_v53 = vpop.f32.mrf.mxu1 }
 0x3c0   : > { %v2780_v9 = vadd.f32 %v4865_v29, %v2779_v53 }
 0x3c2   : > { %2831 = vst [vmem:[%s4869_s17 + $0x98] sm:$0xff] %v2780_v9 }
 0x3c7   : > { %v2782_v62 = vpop.f32.mrf.mxu1 }
 0x3c8   : > { %v2783_v63 = vadd.f32 %v4865_v29, %v2782_v62 }
 0x3ca   : > { %2832 = vst [vmem:[%s4869_s17 + $0xa0] sm:$0xff] %v2783_v63 }
 0x3cf   : > { %v2784_v35 = vpop.f32.mrf.mxu1 }
 0x3d0   : > { %v2785_v50 = vadd.f32 %v4865_v29, %v2784_v35 }
 0x3d2   : > { %2833 = vst [vmem:[%s4869_s17 + $0xa8] sm:$0xff] %v2785_v50 }
 0x3d7   : > { %v2787_v55 = vpop.f32.mrf.mxu1 }
 0x3d8   : > { %v2788_v37 = vadd.f32 %v4865_v29, %v2787_v55 }
 0x3da   : > { %2834 = vst [vmem:[%s4869_s17 + $0xb0] sm:$0xff] %v2788_v37 }
 0x3df   : > { %v2789_v48 = vpop.f32.mrf.mxu1 }
 0x3e0   : > { %v2790_v46 = vadd.f32 %v4865_v29, %v2789_v48 }
 0x3e2   : > { %2835 = vst [vmem:[%s4869_s17 + $0xb8] sm:$0xff] %v2790_v46 }
 0x3e7   : > { %v2792_v4 = vpop.f32.mrf.mxu1 }
 0x3e8   : > { %v2793_v57 = vadd.f32 %v4865_v29, %v2792_v4 }
 0x3ea   : > { %2836 = vst [vmem:[%s4869_s17 + $0xc0] sm:$0xff] %v2793_v57 }
 0x3ef   : > { %v2794_v27 = vpop.f32.mrf.mxu1 }
 0x3f0   : > { %v2795_v52 = vadd.f32 %v4865_v29, %v2794_v27 }
 0x3f2   : > { %2837 = vst [vmem:[%s4869_s17 + $0xc8] sm:$0xff] %v2795_v52 }
 0x3f7   : > { %v2797_v45 = vpop.f32.mrf.mxu1 }
 0x3f8   : > { %v2798_v21 = vadd.f32 %v4865_v29, %v2797_v45 }
 0x3fa   : > { %2838 = vst [vmem:[%s4869_s17 + $0xd0] sm:$0xff] %v2798_v21 }
 0x3ff   : > { %v2799_v61 = vpop.f32.mrf.mxu1 }
 0x400   : > { %v2800_v51 = vadd.f32 %v4865_v29, %v2799_v61 }
 0x402   : > { %2839 = vst [vmem:[%s4869_s17 + $0xd8] sm:$0xff] %v2800_v51 }
 0x407   : > { %v2802_v38 = vpop.f32.mrf.mxu1 }
 0x408   : > { %v2803_v39 = vadd.f32 %v4865_v29, %v2802_v38 }
 0x40a   : > { %2840 = vst [vmem:[%s4869_s17 + $0xe0] sm:$0xff] %v2803_v39 }
 0x40f   : > { %v2804_v20 = vpop.f32.mrf.mxu1 }
 0x410   : > { %v2805_v3 = vadd.f32 %v4865_v29, %v2804_v20 }
 0x412   : > { %2841 = vst [vmem:[%s4869_s17 + $0xe8] sm:$0xff] %v2805_v3 }
 0x417   : > { %v2807_v42 = vpop.f32.mrf.mxu1 }
 0x418   : > { %v2808_v41 = vadd.f32 %v4865_v29, %v2807_v42 }
 0x41a   : > { %2842 = vst [vmem:[%s4869_s17 + $0xf0] sm:$0xff] %v2808_v41 }
 0x41f   : > { %v2809_v36 = vpop.f32.mrf.mxu1 }
 0x420   : > { %v2810_v54 = vadd.f32 %v4865_v29, %v2809_v36 }
 0x422   : > { %2843 = vst [vmem:[%s4869_s17 + $0xf8] sm:$0xff] %v2810_v54 }
 0x423   : > { %3681 = shalt.err (!%p3678_p10)
}
 0x424   : > { %s3815_s7 = smov 128   ;;  %s3816_s13 = smov 8  }
 0x425   : > { %3359 = dma.vmem_to_hbm [thread:$0]  (%p4017_p3), %s2860_s0, 4096, %s2862_s4, %s2845_s20, %s3815_s7, %s3815_s7, %s3816_s13  }
 0x426 PF: > { %p3382_p11 = scmp.ge.s32.totalorder %s3808_s6, 2  ;;  %s2876_s27 = sand.u32 1, %s3756_s18  }
 0x427   : > { %s2877_s12 = scalar_lea.sflag [#allocation5], %s2876_s27 }
 0x428   : > { %p3378_p1 = pnand %p3382_p11, %p4022_p2 }
 0x42a   : > { %p3379_p6 = pneg %p3378_p1 }
 0x42c   : > { %3751 = dma.done.wait (%p3379_p6), %s2877_s12, 4096  }
 0x42d   : > { %3753 = vsyncadd (%p3379_p6), %s2877_s12, 4294963200  ;;  %s27_s6 = sadd.s32 1, %s3808_s6   ;;  %s5141_s21 = sld [smem:[#allocation17_spill]] }
 0x42e   : > { %p4999_p13 = scmp.ge.s32.totalorder %s27_s6, 12   ;;  %s5142_s20 = sld [smem:[#allocation29_spill]] }
 0x42f   : > { %s5143_s26 = sld [smem:[#allocation18_spill]]  ;;  %s5151_s18 = smov %s3760_s19 }
 0x430   : > { %s5144_s8 = sld [smem:[#allocation27_spill]]  ;;  %s5156_s24 = smov %s3784_s25 }
 0x431   : > { %s5145_s30 = sld [smem:[#allocation19_spill]]  ;;  %s5159_s27 = smov %s3800_s29 }
 0x432   : > { %s5146_s14 = sld [smem:[#allocation28_spill]] }
 0x433   : > { %s5147_s28 = sld [smem:[#allocation22_spill]]  ;;  %s5152_s19 = smov %s5141_s21 }
 0x434   : > { %s5148_s5 = sld [smem:[#allocation24_spill]]  ;;  %s5153_s21 = smov %s3772_s22 }
 0x435   : > { %s5149_s0 = sld [smem:[#allocation26_spill]]  ;;  %s5154_s22 = smov %s5143_s26 }
 0x436   : > { %s5155_s23 = smov %s5144_s8 }
 0x437   : > { %s5157_s25 = smov %s5145_s30  ;;  %26 = sbr.rel (!%p4999_p13) target bundleno = 20 (0x14), region = 143 }
 0x438   : > { %s5158_s26 = smov %s5146_s14 }
 0x43a   : > { %s5160_s29 = smov %s5148_s5 }
 0x43b   : > { %s5161_s30 = smov %s5149_s0 }
 0x43c   :  { %2883 = vsyncpa [#allocation4], 1 }
 0x43d   :  { %2885 = vsyncpa [#allocation4 + $0x1], 1 }
 0x43e   :  { %2886 = vsyncpa [#allocation7], 1 }
 0x43f   :  { %2888 = vsyncpa [#allocation7 + $0x1], 1 }
 0x440   :  { %2889 = vsyncpa [#allocation10], 1 }
 0x441   :  { %2891 = vsyncpa [#allocation10 + $0x1], 1 }
 0x442   :  { %2892 = vsyncpa [#allocation5], 1 }
 0x443   :  { %2894 = vsyncpa [#allocation5 + $0x1], 1 }

</bundles_post_ra>
